<compile_context>
chip_gen: v5e
topology: v5e:2x2
jax: 0.10.0
libtpu: 0.0.40
codegen_flags: <defaults>
</compile_context>

<pallas_src>
import functools

import jax
import jax.numpy as jnp
from jax import lax
from jax.experimental import pallas as pl
from jax.experimental.pallas import tpu as pltpu


# ----------------------------------------------------------------------------
# Kernel
# ----------------------------------------------------------------------------
def _bottleneck_kernel(x_ref,     # (C, L)        L = NB*H*W lanes (NB images)
                       m_ref,     # (9, Cp, L)    per-tap validity masks (0/1), f32
                       w1_ref,    # (Cp, C)       1x1 reduce, BN1 scale folded, bf16
                       b1_ref,    # (Cp, 1)       BN1 shift, f32
                       w2_ref,    # (Cp, 9*Cp)    3x3 im2col weights, BN2 scale folded, bf16
                       b2_ref,    # (Cp, 1)       BN2 shift, f32
                       w3_ref,    # (C, Cp)       1x1 expand, BN3 scale folded, bf16
                       b3_ref,    # (C, 1)        BN3 shift, f32
                       o_ref,     # (C, L)
                       *, W):
    L = x_ref.shape[1]
    x = x_ref[...]                                              # (C, L) f32 (residual)

    # --- ext_conv1: 1x1 conv -> BN(shift) -> ReLU ---------------------------
    t1 = jnp.dot(w1_ref[...], x.astype(jnp.bfloat16),
                 preferred_element_type=jnp.float32)
    t1 = jnp.maximum(t1 + b1_ref[...], 0.0)                     # (Cp, L) f32

    # --- ext_conv2: 3x3 conv (pad=1) as one im2col matmul -------------------
    # tap (ky,kx): patch[:, q] = t1[:, q + dy*W + dx] where (dy,dx)=(ky-1,kx-1)
    # and 0 where the neighbor falls outside its image.  The circular lane
    # roll's wrapped / seam-crossing lanes are exactly the masked border
    # pixels, so stacking NB images on the lane axis stays exact.
    taps = []
    for ky in range(3):
        for kx in range(3):
            s = (ky - 1) * W + (kx - 1)
            if s == 0:
                taps.append(t1)                                 # center tap: always valid
            else:
                rolled = pltpu.roll(t1, (-s) % L, axis=1)       # rolled[:,q] = t1[:,q+s]
                taps.append(rolled * m_ref[ky * 3 + kx])        # aligned vreg-wise mul
    patches = jnp.concatenate(taps, axis=0).astype(jnp.bfloat16)   # (9*Cp, L)
    # TODO(synk): if a bundle dump shows the concatenate double-materializing,
    # write taps into a VMEM((9*Cp, L)) scratch at static row offsets instead.
    t2 = jnp.dot(w2_ref[...], patches, preferred_element_type=jnp.float32)
    t2 = jnp.maximum(t2 + b2_ref[...], 0.0)                     # (Cp, L) f32

    # --- ext_conv3: 1x1 conv -> BN(shift) -> ReLU ---------------------------
    t3 = jnp.dot(w3_ref[...], t2.astype(jnp.bfloat16),
                 preferred_element_type=jnp.float32)
    t3 = jnp.maximum(t3 + b3_ref[...], 0.0)                     # (C, L) f32

    # --- ext_regul (Dropout2d): identity in eval mode -----------------------
    # TODO(synk): training-mode Dropout2d (per-channel Bernoulli) and the
    # PReLU (relu=False) path are not modeled.

    # --- residual add + output activation (ReLU) ----------------------------
    o_ref[...] = jnp.maximum(x + t3, 0.0).astype(o_ref.dtype)


# ----------------------------------------------------------------------------
# Wrapper
# ----------------------------------------------------------------------------
def _make_tap_masks(H, W):
    """(9, H*W) float32 validity masks for the 3x3 taps (pad=1)."""
    p = jnp.arange(H * W, dtype=jnp.int32)
    y, x = p // W, p % W
    masks = []
    for ky in range(3):
        for kx in range(3):
            dy, dx = ky - 1, kx - 1
            ok = (y + dy >= 0) & (y + dy < H) & (x + dx >= 0) & (x + dx < W)
            masks.append(ok.astype(jnp.float32))
    return jnp.stack(masks)                                      # (9, H*W)


def regular_bottleneck(x_nchw, kp, images_per_step=None):
    """x_nchw: (N, C, H, W) float32.  Returns (N, C, H, W)."""
    N, C, H, W = x_nchw.shape
    P = H * W
    if images_per_step is None:
        # Keep >= 2 grid steps when possible so v7x megacore can shard them.
        images_per_step = N // 2 if (N % 2 == 0 and N >= 2) else N
    NB = images_per_step
    assert N % NB == 0, "images_per_step must divide the batch"
    G = N // NB
    L = NB * P
    Cp = kp["w1"].shape[0]

    # Lane-stack the batch: channels on sublanes, all pixels of all images on lanes.
    x = x_nchw.reshape(N, C, P).transpose(1, 0, 2).reshape(C, N * P)

    # Pre-broadcast tap masks to (9, Cp, NB*P): aligned per-tap multiplies.
    masks = _make_tap_masks(H, W)                                # (9, P)
    masks = jnp.broadcast_to(masks[:, None, None, :], (9, Cp, NB, P)).reshape(9, Cp, L)

    weight_args = (masks, kp["w1"], kp["b1"], kp["w2"], kp["b2"],
                   kp["w3"], kp["b3"])
    full = lambda a: pl.BlockSpec(a.shape, lambda g: (0,) * a.ndim)

    out = pl.pallas_call(
        functools.partial(_bottleneck_kernel, W=W),
        out_shape=jax.ShapeDtypeStruct((C, N * P), x_nchw.dtype),
        grid_spec=pltpu.PrefetchScalarGridSpec(
            num_scalar_prefetch=0,
            grid=(G,),
            in_specs=[pl.BlockSpec((C, L), lambda g: (0, g))]
                     + [full(a) for a in weight_args],
            out_specs=pl.BlockSpec((C, L), lambda g: (0, g)),
        ),
        compiler_params=pltpu.CompilerParams(
            dimension_semantics=("parallel",)),   # batch-blocks -> both TCs on v7x
    )(x, *weight_args)

    return out.reshape(C, N, P).transpose(1, 0, 2).reshape(N, C, H, W)


# ----------------------------------------------------------------------------
# Parameters: base (torch-like) weights + BN stats, and kernel-layout packing
# ----------------------------------------------------------------------------
def make_params(key, channels, internal_ratio=4, eps=1e-5):
    Ci = channels // internal_ratio
    ks = jax.random.split(key, 15)

    def bn_fold(kg, kb, km, kv, n):
        gamma = jax.random.uniform(kg, (n,), jnp.float32, 0.5, 1.5)
        beta = 0.1 * jax.random.normal(kb, (n,), jnp.float32)
        mean = 0.1 * jax.random.normal(km, (n,), jnp.float32)
        var = jax.random.uniform(kv, (n,), jnp.float32, 0.5, 1.5)
        scale = gamma / jnp.sqrt(var + eps)
        shift = beta - mean * scale
        return scale, shift

    w1 = 0.2 * jax.random.normal(ks[0], (Ci, channels), jnp.float32)   # [out, in]
    s1, b1 = bn_fold(ks[1], ks[2], ks[3], ks[4], Ci)
    w2 = 0.2 * jax.random.normal(ks[5], (Ci, Ci, 3, 3), jnp.float32)   # [out, in, kh, kw]
    s2, b2 = bn_fold(ks[6], ks[7], ks[8], ks[9], Ci)
    w3 = 0.2 * jax.random.normal(ks[10], (channels, Ci), jnp.float32)  # [out, in]
    s3, b3 = bn_fold(ks[11], ks[12], ks[13], ks[14], channels)
    return dict(w1=w1, s1=s1, b1=b1, w2=w2, s2=s2, b2=b2, w3=w3, s3=s3, b3=b3)


def pack_params(p):
    """Kernel layout: fold BN scale into weights, pad internal channels to a
    sublane tile (8), cast MXU operands to bf16, keep shifts in f32."""
    Ci, C = p["w1"].shape
    Cp = ((Ci + 7) // 8) * 8
    pad_r = lambda a: jnp.pad(a, ((0, Cp - Ci),) + ((0, 0),) * (a.ndim - 1))

    w1 = pad_r(p["w1"] * p["s1"][:, None])                       # (Cp, C), scale folded
    b1 = pad_r(p["b1"][:, None])                                 # (Cp, 1)

    w2 = p["w2"] * p["s2"][:, None, None, None]                  # scale folded
    w2 = jnp.transpose(w2, (0, 2, 3, 1))                         # (out, kh, kw, in)
    w2 = jnp.pad(w2, ((0, Cp - Ci), (0, 0), (0, 0), (0, Cp - Ci)))
    w2 = w2.reshape(Cp, 9 * Cp)                                  # col = (ky*3+kx)*Cp + c_in
    b2 = pad_r(p["b2"][:, None])                                 # (Cp, 1)

    w3 = jnp.pad(p["w3"] * p["s3"][:, None], ((0, 0), (0, Cp - Ci)))   # (C, Cp)
    b3 = p["b3"][:, None]                                        # (C, 1)
    return dict(w1=w1.astype(jnp.bfloat16), b1=b1,
                w2=w2.astype(jnp.bfloat16), b2=b2,
                w3=w3.astype(jnp.bfloat16), b3=b3)


# ----------------------------------------------------------------------------
# Pure-JAX f32 reference (lax conv), for correctness check
# ----------------------------------------------------------------------------
def reference_forward(x, p):
    dn = ("NCHW", "OIHW", "NCHW")
    Ci, C = p["w1"].shape

    def bn_relu(y, s, b):
        return jnp.maximum(y * s[None, :, None, None] + b[None, :, None, None], 0.0)

    y = lax.conv_general_dilated(x, p["w1"].reshape(Ci, C, 1, 1), (1, 1), "VALID",
                                 dimension_numbers=dn)
    y = bn_relu(y, p["s1"], p["b1"])
    y = lax.conv_general_dilated(y, p["w2"], (1, 1), ((1, 1), (1, 1)),
                                 dimension_numbers=dn)
    y = bn_relu(y, p["s2"], p["b2"])
    y = lax.conv_general_dilated(y, p["w3"].reshape(C, Ci, 1, 1), (1, 1), "VALID",
                                 dimension_numbers=dn)
    y = bn_relu(y, p["s3"], p["b3"])
    return jnp.maximum(x + y, 0.0)        # dropout = identity (eval)


# ----------------------------------------------------------------------------
if __name__ == "__main__":
    key = jax.random.PRNGKey(0)
    k_x, k_p = jax.random.split(key)

    N, C, H, W = 8, 16, 16, 16
    x = jax.random.normal(k_x, (N, C, H, W), jnp.float32)
    base = make_params(k_p, C, internal_ratio=4)
    kp = pack_params(base)

    out = jax.block_until_ready(regular_bottleneck(x, kp, images_per_step=4))
    ref = jax.block_until_ready(reference_forward(x, base))

    assert out.shape == (N, C, H, W)
    err = jnp.max(jnp.abs(out - ref))
    # bf16 MXU operands vs f32 lax-conv reference -> relaxed tolerance.
    assert jnp.allclose(out, ref, atol=5e-2, rtol=5e-2), f"max abs err {err}"
    print("KERNEL_OK")
</pallas_src>

<mosaic_0001>
module attributes {stable_mosaic.version = 11 : i64} {
  func.func @_bottleneck_kernel(%arg0: i32, %arg1: memref<16x1024xf32, #tpu.memory_space<vmem>>, %arg2: memref<9x8x1024xf32, #tpu.memory_space<vmem>>, %arg3: memref<8x16xbf16, #tpu.memory_space<vmem>>, %arg4: memref<8x1xf32, #tpu.memory_space<vmem>>, %arg5: memref<8x72xbf16, #tpu.memory_space<vmem>>, %arg6: memref<8x1xf32, #tpu.memory_space<vmem>>, %arg7: memref<16x8xbf16, #tpu.memory_space<vmem>>, %arg8: memref<16x1xf32, #tpu.memory_space<vmem>>, %arg9: memref<16x1024xf32, #tpu.memory_space<vmem>>) attributes {dimension_semantics = [#tpu.dimension_semantics<parallel>], iteration_bounds = array<i64: 2>, scalar_prefetch = 0 : i64, scratch_operands = 0 : i64, tpu.core_type = #tpu.core_type<tc>, window_params = [{transform_indices = @transform_0, window_bounds = array<i64: 16, 1024>}, {pipeline_mode = #tpu.pipeline_mode<synchronous>, transform_indices = @transform_1, window_bounds = array<i64: 9, 8, 1024>}, {pipeline_mode = #tpu.pipeline_mode<synchronous>, transform_indices = @transform_2, window_bounds = array<i64: 8, 16>}, {pipeline_mode = #tpu.pipeline_mode<synchronous>, transform_indices = @transform_3, window_bounds = array<i64: 8, 1>}, {pipeline_mode = #tpu.pipeline_mode<synchronous>, transform_indices = @transform_4, window_bounds = array<i64: 8, 72>}, {pipeline_mode = #tpu.pipeline_mode<synchronous>, transform_indices = @transform_5, window_bounds = array<i64: 8, 1>}, {pipeline_mode = #tpu.pipeline_mode<synchronous>, transform_indices = @transform_6, window_bounds = array<i64: 16, 8>}, {pipeline_mode = #tpu.pipeline_mode<synchronous>, transform_indices = @transform_7, window_bounds = array<i64: 16, 1>}, {transform_indices = @transform_8, window_bounds = array<i64: 16, 1024>}]} {
    %c0 = arith.constant 0 : index
    %c0_0 = arith.constant 0 : index
    %0 = vector.load %arg1[%c0, %c0_0] : memref<16x1024xf32, #tpu.memory_space<vmem>>, vector<16x1024xf32>
    %c0_1 = arith.constant 0 : index
    %c0_2 = arith.constant 0 : index
    %1 = vector.load %arg3[%c0_1, %c0_2] : memref<8x16xbf16, #tpu.memory_space<vmem>>, vector<8x16xbf16>
    %2 = arith.truncf %0 : vector<16x1024xf32> to vector<16x1024xbf16>
    %cst = arith.constant dense<0.000000e+00> : vector<8x1024xf32>
    %3 = tpu.matmul %1, %2, %cst {dimension_numbers = #tpu.dot_dimension_numbers<[1], [0], [0], [1], [0, 0, 1, 1], [], []>} : vector<8x16xbf16>, vector<16x1024xbf16>, vector<8x1024xf32> -> vector<8x1024xf32>
    %c0_3 = arith.constant 0 : index
    %c0_4 = arith.constant 0 : index
    %4 = vector.load %arg4[%c0_3, %c0_4] : memref<8x1xf32, #tpu.memory_space<vmem>>, vector<8x1xf32>
    %5 = vector.broadcast %4 : vector<8x1xf32> to vector<8x1024xf32>
    %6 = arith.addf %3, %5 : vector<8x1024xf32>
    %cst_5 = arith.constant 0.000000e+00 : f32
    %7 = vector.broadcast %cst_5 : f32 to vector<8x1024xf32>
    %8 = arith.maximumf %6, %7 : vector<8x1024xf32>
    %c17_i32 = arith.constant 17 : i32
    %9 = tpu.dynamic_rotate %8 by %c17_i32 dim 1 : vector<8x1024xf32>, i32 -> vector<8x1024xf32>
    %c0_6 = arith.constant 0 : index
    %c0_7 = arith.constant 0 : index
    %c0_8 = arith.constant 0 : index
    %10 = vector.load %arg2[%c0_6, %c0_7, %c0_8] : memref<9x8x1024xf32, #tpu.memory_space<vmem>>, vector<1x8x1024xf32>
    %11 = vector.shape_cast %10 : vector<1x8x1024xf32> to vector<8x1024xf32>
    %12 = arith.mulf %9, %11 : vector<8x1024xf32>
    %c16_i32 = arith.constant 16 : i32
    %13 = tpu.dynamic_rotate %8 by %c16_i32 dim 1 : vector<8x1024xf32>, i32 -> vector<8x1024xf32>
    %c1 = arith.constant 1 : index
    %c0_9 = arith.constant 0 : index
    %c0_10 = arith.constant 0 : index
    %14 = vector.load %arg2[%c1, %c0_9, %c0_10] : memref<9x8x1024xf32, #tpu.memory_space<vmem>>, vector<1x8x1024xf32>
    %15 = vector.shape_cast %14 : vector<1x8x1024xf32> to vector<8x1024xf32>
    %16 = arith.mulf %13, %15 : vector<8x1024xf32>
    %c15_i32 = arith.constant 15 : i32
    %17 = tpu.dynamic_rotate %8 by %c15_i32 dim 1 : vector<8x1024xf32>, i32 -> vector<8x1024xf32>
    %c2 = arith.constant 2 : index
    %c0_11 = arith.constant 0 : index
    %c0_12 = arith.constant 0 : index
    %18 = vector.load %arg2[%c2, %c0_11, %c0_12] : memref<9x8x1024xf32, #tpu.memory_space<vmem>>, vector<1x8x1024xf32>
    %19 = vector.shape_cast %18 : vector<1x8x1024xf32> to vector<8x1024xf32>
    %20 = arith.mulf %17, %19 : vector<8x1024xf32>
    %c1_i32 = arith.constant 1 : i32
    %21 = tpu.dynamic_rotate %8 by %c1_i32 dim 1 : vector<8x1024xf32>, i32 -> vector<8x1024xf32>
    %c3 = arith.constant 3 : index
    %c0_13 = arith.constant 0 : index
    %c0_14 = arith.constant 0 : index
    %22 = vector.load %arg2[%c3, %c0_13, %c0_14] : memref<9x8x1024xf32, #tpu.memory_space<vmem>>, vector<1x8x1024xf32>
    %23 = vector.shape_cast %22 : vector<1x8x1024xf32> to vector<8x1024xf32>
    %24 = arith.mulf %21, %23 : vector<8x1024xf32>
    %c1023_i32 = arith.constant 1023 : i32
    %25 = tpu.dynamic_rotate %8 by %c1023_i32 dim 1 : vector<8x1024xf32>, i32 -> vector<8x1024xf32>
    %c5 = arith.constant 5 : index
    %c0_15 = arith.constant 0 : index
    %c0_16 = arith.constant 0 : index
    %26 = vector.load %arg2[%c5, %c0_15, %c0_16] : memref<9x8x1024xf32, #tpu.memory_space<vmem>>, vector<1x8x1024xf32>
    %27 = vector.shape_cast %26 : vector<1x8x1024xf32> to vector<8x1024xf32>
    %28 = arith.mulf %25, %27 : vector<8x1024xf32>
    %c1009_i32 = arith.constant 1009 : i32
    %29 = tpu.dynamic_rotate %8 by %c1009_i32 dim 1 : vector<8x1024xf32>, i32 -> vector<8x1024xf32>
    %c6 = arith.constant 6 : index
    %c0_17 = arith.constant 0 : index
    %c0_18 = arith.constant 0 : index
    %30 = vector.load %arg2[%c6, %c0_17, %c0_18] : memref<9x8x1024xf32, #tpu.memory_space<vmem>>, vector<1x8x1024xf32>
    %31 = vector.shape_cast %30 : vector<1x8x1024xf32> to vector<8x1024xf32>
    %32 = arith.mulf %29, %31 : vector<8x1024xf32>
    %c1008_i32 = arith.constant 1008 : i32
    %33 = tpu.dynamic_rotate %8 by %c1008_i32 dim 1 : vector<8x1024xf32>, i32 -> vector<8x1024xf32>
    %c7 = arith.constant 7 : index
    %c0_19 = arith.constant 0 : index
    %c0_20 = arith.constant 0 : index
    %34 = vector.load %arg2[%c7, %c0_19, %c0_20] : memref<9x8x1024xf32, #tpu.memory_space<vmem>>, vector<1x8x1024xf32>
    %35 = vector.shape_cast %34 : vector<1x8x1024xf32> to vector<8x1024xf32>
    %36 = arith.mulf %33, %35 : vector<8x1024xf32>
    %c1007_i32 = arith.constant 1007 : i32
    %37 = tpu.dynamic_rotate %8 by %c1007_i32 dim 1 : vector<8x1024xf32>, i32 -> vector<8x1024xf32>
    %c8 = arith.constant 8 : index
    %c0_21 = arith.constant 0 : index
    %c0_22 = arith.constant 0 : index
    %38 = vector.load %arg2[%c8, %c0_21, %c0_22] : memref<9x8x1024xf32, #tpu.memory_space<vmem>>, vector<1x8x1024xf32>
    %39 = vector.shape_cast %38 : vector<1x8x1024xf32> to vector<8x1024xf32>
    %40 = arith.mulf %37, %39 : vector<8x1024xf32>
    %41 = tpu.concatenate %12, %16, %20, %24, %8, %28, %32, %36, %40 in 0 : vector<8x1024xf32>, vector<8x1024xf32>, vector<8x1024xf32>, vector<8x1024xf32>, vector<8x1024xf32>, vector<8x1024xf32>, vector<8x1024xf32>, vector<8x1024xf32>, vector<8x1024xf32> -> vector<72x1024xf32>
    %42 = arith.truncf %41 : vector<72x1024xf32> to vector<72x1024xbf16>
    %c0_23 = arith.constant 0 : index
    %c0_24 = arith.constant 0 : index
    %43 = vector.load %arg5[%c0_23, %c0_24] : memref<8x72xbf16, #tpu.memory_space<vmem>>, vector<8x72xbf16>
    %cst_25 = arith.constant dense<0.000000e+00> : vector<8x1024xf32>
    %44 = tpu.matmul %43, %42, %cst_25 {dimension_numbers = #tpu.dot_dimension_numbers<[1], [0], [0], [1], [0, 0, 1, 1], [], []>} : vector<8x72xbf16>, vector<72x1024xbf16>, vector<8x1024xf32> -> vector<8x1024xf32>
    %c0_26 = arith.constant 0 : index
    %c0_27 = arith.constant 0 : index
    %45 = vector.load %arg6[%c0_26, %c0_27] : memref<8x1xf32, #tpu.memory_space<vmem>>, vector<8x1xf32>
    %46 = vector.broadcast %45 : vector<8x1xf32> to vector<8x1024xf32>
    %47 = arith.addf %44, %46 : vector<8x1024xf32>
    %cst_28 = arith.constant 0.000000e+00 : f32
    %48 = vector.broadcast %cst_28 : f32 to vector<8x1024xf32>
    %49 = arith.maximumf %47, %48 : vector<8x1024xf32>
    %c0_29 = arith.constant 0 : index
    %c0_30 = arith.constant 0 : index
    %50 = vector.load %arg7[%c0_29, %c0_30] : memref<16x8xbf16, #tpu.memory_space<vmem>>, vector<16x8xbf16>
    %51 = arith.truncf %49 : vector<8x1024xf32> to vector<8x1024xbf16>
    %cst_31 = arith.constant dense<0.000000e+00> : vector<16x1024xf32>
    %52 = tpu.matmul %50, %51, %cst_31 {dimension_numbers = #tpu.dot_dimension_numbers<[1], [0], [0], [1], [0, 0, 1, 1], [], []>} : vector<16x8xbf16>, vector<8x1024xbf16>, vector<16x1024xf32> -> vector<16x1024xf32>
    %c0_32 = arith.constant 0 : index
    %c0_33 = arith.constant 0 : index
    %53 = vector.load %arg8[%c0_32, %c0_33] : memref<16x1xf32, #tpu.memory_space<vmem>>, vector<16x1xf32>
    %54 = vector.broadcast %53 : vector<16x1xf32> to vector<16x1024xf32>
    %55 = arith.addf %52, %54 : vector<16x1024xf32>
    %cst_34 = arith.constant 0.000000e+00 : f32
    %56 = vector.broadcast %cst_34 : f32 to vector<16x1024xf32>
    %57 = arith.maximumf %55, %56 : vector<16x1024xf32>
    %58 = arith.addf %0, %57 : vector<16x1024xf32>
    %cst_35 = arith.constant 0.000000e+00 : f32
    %59 = vector.broadcast %cst_35 : f32 to vector<16x1024xf32>
    %60 = arith.maximumf %58, %59 : vector<16x1024xf32>
    %c0_36 = arith.constant 0 : index
    %c0_37 = arith.constant 0 : index
    %61 = vector.load %arg9[%c0_36, %c0_37] : memref<16x1024xf32, #tpu.memory_space<vmem>>, vector<16x1024xf32>
    tpu.vector_store %arg9[%c0_36, %c0_37], %60 {strides = array<i32>} : memref<16x1024xf32, #tpu.memory_space<vmem>>, vector<16x1024xf32>,
    return
  }
  func.func @transform_0(%arg0: i32) -> (i32, i32) {
    %c0_i32 = arith.constant 0 : i32
    %c0_i32_0 = arith.constant 0 : i32
    return %c0_i32, %arg0 : i32, i32
  }
  func.func @transform_1(%arg0: i32) -> (i32, i32, i32) {
    %c0_i32 = arith.constant 0 : i32
    %c0_i32_0 = arith.constant 0 : i32
    %c0_i32_1 = arith.constant 0 : i32
    %c0_i32_2 = arith.constant 0 : i32
    return %c0_i32, %c0_i32_0, %c0_i32_1 : i32, i32, i32
  }
  func.func @transform_2(%arg0: i32) -> (i32, i32) {
    %c0_i32 = arith.constant 0 : i32
    %c0_i32_0 = arith.constant 0 : i32
    %c0_i32_1 = arith.constant 0 : i32
    return %c0_i32, %c0_i32_0 : i32, i32
  }
  func.func @transform_3(%arg0: i32) -> (i32, i32) {
    %c0_i32 = arith.constant 0 : i32
    %c0_i32_0 = arith.constant 0 : i32
    %c0_i32_1 = arith.constant 0 : i32
    return %c0_i32, %c0_i32_0 : i32, i32
  }
  func.func @transform_4(%arg0: i32) -> (i32, i32) {
    %c0_i32 = arith.constant 0 : i32
    %c0_i32_0 = arith.constant 0 : i32
    %c0_i32_1 = arith.constant 0 : i32
    return %c0_i32, %c0_i32_0 : i32, i32
  }
  func.func @transform_5(%arg0: i32) -> (i32, i32) {
    %c0_i32 = arith.constant 0 : i32
    %c0_i32_0 = arith.constant 0 : i32
    %c0_i32_1 = arith.constant 0 : i32
    return %c0_i32, %c0_i32_0 : i32, i32
  }
  func.func @transform_6(%arg0: i32) -> (i32, i32) {
    %c0_i32 = arith.constant 0 : i32
    %c0_i32_0 = arith.constant 0 : i32
    %c0_i32_1 = arith.constant 0 : i32
    return %c0_i32, %c0_i32_0 : i32, i32
  }
  func.func @transform_7(%arg0: i32) -> (i32, i32) {
    %c0_i32 = arith.constant 0 : i32
    %c0_i32_0 = arith.constant 0 : i32
    %c0_i32_1 = arith.constant 0 : i32
    return %c0_i32, %c0_i32_0 : i32, i32
  }
  func.func @transform_8(%arg0: i32) -> (i32, i32) {
    %c0_i32 = arith.constant 0 : i32
    %c0_i32_0 = arith.constant 0 : i32
    return %c0_i32, %arg0 : i32, i32
  }
}

</mosaic_0001>

<bundles_post_ra>
// kernel: tpu_custom_call.1
= control target key start
LH: loop header
LB: loop body
LE: loop exit
PB: predicated region body
PF: predicated region fallthrough
CT: control target
= control target key end

     0   :  { %s2429_s0 = inlined_call_operand.hbm [shape: f32[16,2048], index: 0, kind: input, shape index: {}]   ;;  %s2430_s1 = inlined_call_operand.hbm [shape: f32[9,8,1024], index: 1, kind: input, shape index: {}]   ;;  %s2431_s2 = inlined_call_operand.vmem [shape: bf16[8,16], index: 2, kind: input, shape index: {}]   ;;  %s2432_s3 = inlined_call_operand.vmem [shape: f32[8,1], index: 3, kind: input, shape index: {}]   ;;  %s2433_s4 = inlined_call_operand.vmem [shape: bf16[8,72], index: 4, kind: input, shape index: {}]   ;;  %s2434_s5 = inlined_call_operand.vmem [shape: f32[8,1], index: 5, kind: input, shape index: {}]   ;;  %s2435_s6 = inlined_call_operand.vmem [shape: bf16[16,8], index: 6, kind: input, shape index: {}]   ;;  %s2436_s7 = inlined_call_operand.vmem [shape: f32[16,1], index: 7, kind: input, shape index: {}]   ;;  %s2437_s8 = inlined_call_operand.hbm [shape: f32[16,2048], index: 8, kind: output, shape index: {}]  }
   0x1   :  { %2441 = sst [smem:[#allocation13_spill]] %s2430_s1 }
   0x2   :  { %13 = vsyncpa [#allocation3], 0 }
   0x3   :  { %15 = vsyncpa [#allocation3 + $0x1], 0 }
   0x4   :  { %16 = vsyncpa [#allocation6], 0 }
   0x5   :  { %17 = vsyncpa [#allocation4], 0 }
   0x6   :  { %19 = vsyncpa [#allocation4 + $0x1], 0  ;;  %s1679_s27 = smov 0   ;;  %s1681_s28 = smov 0  }
   0x7   :  { %s1683_s29 = smov 0   ;;  %s1685_s30 = smov 0  }
   0x8 LB: > { %2442 = sst [smem:[#allocation11_spill]] %s1612_s29  ;;  %s1700_s9 = sadd.s32 4294967295, %s1616_s30   ;;  %s1616_s30 = sphi %s1685_s30, %s2457_s30   ;;  %s1612_s29 = sphi %s1683_s29, %s2454_s29   ;;  %s1608_s28 = sphi %s1681_s28, %s2456_s28   ;;  %s1604_s27 = sphi %s1679_s27, %s2455_s27  }
   0x9   : > { %s1348_s10 = sadd.s32 4294967294, %s1616_s30   ;;  %p45_p0 = scmp.ne.s32.totalorder %s1608_s28, %s1604_s27 }
   0xa   : > { %p46_p1 = scmp.eq.s32.totalorder %s1700_s9, 0  ;;  %p216_p2 = scmp.eq.s32.totalorder %s1700_s9, 1 }
   0xb   : > { %p222_p3 = scmp.eq.s32.totalorder %s1348_s10, 1  ;;  %p1349_p5 = scmp.ge.s32.totalorder %s1616_s30, 1 }
   0xc   : > { %p1709_p4 = por %p46_p1, %p45_p0  ;;  %p229_p7 = scmp.lt.s32.totalorder %s1616_s30, 3 }
   0xd   : > { %p1714_p6 = por %p222_p3, %p45_p0  ;;  %s2445_s1 = sld [smem:[#allocation13_spill]] }
   0xe   : > { %p1722_p8 = pnand %p1349_p5, %p229_p7  ;;  %s1618_s17 = smov [#allocation5]  }
   0xf   : > { %s242_s18 = sshll.u32 %s1618_s17, 4  ;;  %s1732_s19 = sadd.s32 1, %s1616_s30   ;;  %s243_s18 = int_to_ptr.vmem [resolvable:$true] %s242_s18 }
  0x10   : > { %p1403_p9 = pneg %p1722_p8  ;;  %s2438_s20 = smov 1024  }
  0x11   : > { %s2439_s21 = smov 64   ;;  %s29_s22 = ssub.s32 %s1616_s30, %s1732_s19 }
  0x12   : > { %p1404_p10 = pnand %p1403_p9, %p46_p1  ;;  %s32_s23 = sadd.s32 1, %s1612_s29 }
  0x13   : > { %s240_s15 = sshll.u32 %s2445_s1, 4  ;;  %p30_p12 = scmp.eq.s32.totalorder %s29_s22, 0  ;;  %s241_s15 = int_to_ptr.hbm [resolvable:$true] %s240_s15 }
  0x14   : > { %1406 = dma.hbm_to_vmem [thread:$0]  (!%p1404_p10), %s241_s15, 9216, %s243_s18, [#allocation6], %s2438_s20, %s2438_s20, %s2439_s21  }
  0x15   : > { %p39_p13 = scmp.ne.s32.totalorder %s1612_s29, %s1608_s28  ;;  %p40_p0 = scmp.eq.s32.totalorder %s1616_s30, 0 }
  0x16   : > { %p1416_p3 = scmp.lt.s32.totalorder %s1616_s30, 2  ;;  %s274_s26 = sand.u32 1, %s1612_s29  }
  0x17   : > { %s1745_s24 = scalar_select %p30_p12, %s1612_s29, %s32_s23  }
  0x18   : > { %p41_p5 = por %p40_p0, %p39_p13  ;;  %p1749_p7 = por %p216_p2, %p39_p13 }
  0x19   : > { %2447 = sst [smem:[#allocation12_spill]] %s1745_s24  ;;  %s1392_s10 = sshll.u32 %s1616_s30, 6 }
  0x1a   : > { %s1352_s13 = sshll.u32 %s274_s26, 7  ;;  %s283_s17 = scalar_lea.hbm %s2429_s0, %s1392_s10 }
  0x1b   : > { %s284_s18 = sshll.u32 %s283_s17, 4  ;;  %s278_s22 = scalar_lea.vmem [#allocation2], %s1352_s13  ;;  %s285_s18 = int_to_ptr.hbm [resolvable:$true] %s284_s18 }
  0x1c   : > { %s286_s20 = sshll.u32 %s278_s22, 4  ;;  %p1760_p9 = pnand %p1416_p3, %p41_p5  ;;  %s287_s20 = int_to_ptr.vmem [resolvable:$true] %s286_s20 }
  0x1d   : > { %s275_s21 = scalar_lea.sflag [#allocation3], %s274_s26  ;;  %s1516_s1 = sshra.s32 %s285_s18, 4  ;;  %s1517_s1 = int_to_ptr.hbm [resolvable:$true] %s1516_s1 }
  0x1e   : > { %s1518_s24 = scalar_lea.hbm %s1517_s1, 128  ;;  %p1520_p10 = pneg %p1760_p9 }
  0x1f   : > { %p1519_p2 = scmp.ne.s32.totalorder %s1517_s1, %s1518_s24  ;;  %s1523_s14 = scalar_lea.hbm %s2429_s0, 256 }
  0x20   : > { %p1524_p0 = scmp.lt.s32.totalorder %s1517_s1, %s2429_s0  ;;  %p1525_p3 = scmp.lt.s32.totalorder %s1523_s14, %s1518_s24 }
  0x21   : > { %p1521_p12 = pnand %p1520_p10, %p1519_p2 }
  0x22   : > { %p1526_p5 = por %p1525_p3, %p1524_p0 }
  0x23   : > { %p1522_p13 = pneg %p1521_p12 }
  0x25   : > { %p1527_p11 = pnand %p1526_p5, %p1522_p13 }
  0x27   : > { %1530 = shalt.err (!%p1527_p11)
}
  0x28   : > { %s1621_s26 = smov 2048   ;;  %s2450_s22 = smov 64  }
  0x29   : > { %s2451_s29 = smov 1024   ;;  %298 = sbr.rel (%p1722_p8) target bundleno = 761 (0x2f9), region = 52 }
  0x2a   : > { %1410 = dma.hbm_to_vmem [thread:$0]  (!%p1760_p9), %s285_s18, 2048, %s287_s20, %s275_s21, %s1621_s26, %s2451_s29, %s2450_s22  }
  0x2b   : > { %s1779_s10 = sand.u32 (!%p1722_p8), 1, %s1608_s28  }
  0x2c   : > { %s1356_s1 = sshll.u32 (!%p1722_p8), %s1779_s10, 7  ;;  %s301_s24 = scalar_lea.sflag (!%p1722_p8), [#allocation3], %s1779_s10 }
  0x2d   : > { %s1785_s13 = scalar_lea.vmem (!%p1722_p8), [#allocation2], %s1356_s1 }
  0x2e   : > { %1591 = dma.done.wait (%p1709_p4), %s301_s24, 2048  }
  0x2f   : > { %1593 = vsyncadd (%p1709_p4), %s301_s24, 4294965248 }
  0x30   : > { %1595 = dma.done.wait (%p46_p1), [#allocation6], 9216  }
  0x31   : > { %1597 = vsyncadd (%p46_p1), [#allocation6], 4294958080  ;;  %v1622_v0 = vmov 0   ;;  %v346_v1 = vld [vmem:[%s1785_s13] sm:$0xff]  ;;  %v347_v3 = vld [vmem:[%s1785_s13 + $0x8] sm:$0xff]  ;;  %vm377_vm0 = vcmask 130048   ;;  %v509_v58 = vlaneseq }
  0x32   : > { %1467 = vset.pattern.permute.xlu0 %v1622_v0  ;;  %1468 = vset.pattern.permute.xlu2 %v1622_v0  ;;  %v354_v2 = vld [vmem:[%s1785_s13 + $0x40] sm:$0xff]  ;;  %v355_v5 = vld [vmem:[%s1785_s13 + $0x48] sm:$0xff]  ;;  %v348_v6 = vld [vmem:[%s1785_s13 + $0x10] sm:$0xff]  ;;  %s1623_s21 = smov 111   ;;  %s1624_s18 = smov 15   ;;  %vm881_vm2 = vcmask 1043456  }
  0x33   : > { %1469 = vset.pattern.permute.xlu1 %v1622_v0  ;;  %v363_v4 = vpack.c.bf16 %v354_v2, %v346_v1  ;;  %v356_v7 = vld [vmem:[%s1785_s13 + $0x50] sm:$0xff]  ;;  %v364_v8 = vpack.c.bf16 %v355_v5, %v347_v3  ;;  %v349_v10 = vld [vmem:[%s1785_s13 + $0x18] sm:$0xff]  ;;  %v362_v12 = vld [vmem:[%s2431_s2] sm:$0xf]  ;;  %s1625_s23 = smov 112   ;;  %s1626_s14 = smov 1  }
  0x34   : > { %v365_v9 = vpack.c.bf16 %v356_v7, %v348_v6  ;;  %v357_v11 = vld [vmem:[%s1785_s13 + $0x58] sm:$0xff]  ;;  %v371_v14 = vld [vmem:[%s2432_s3] sm:$0xff]  ;;  %v351_v18 = vld [vmem:[%s1785_s13 + $0x28] sm:$0xff]  ;;  %s1627_s15 = smov 17   ;;  %s1628_s17 = smov 127   ;;  %v1937_v62 = vand.u32 127, %v509_v58 }
  0x35   : > { %388 = vmatpush.bf16.msra.mxu0 %v363_v4  ;;  %v366_v13 = vpack.c.bf16 %v357_v11, %v349_v10  ;;  %v350_v15 = vld [vmem:[%s1785_s13 + $0x20] sm:$0xff]  ;;  %401 = vmatpush.bf16.msra.mxu1 %v364_v8  ;;  %v359_v19 = vld [vmem:[%s1785_s13 + $0x68] sm:$0xff]  ;;  %v352_v20 = vld [vmem:[%s1785_s13 + $0x30] sm:$0xff]  ;;  %s1629_s26 = smov 113   ;;  %s1630_s22 = smov 16   ;;  %vm877_vm10 = vcmask 588800  }
  0x36   : > { %v358_v16 = vld [vmem:[%s1785_s13 + $0x60] sm:$0xff]  ;;  %414 = vmatpush.bf16.msra.mxu2 %v365_v9  ;;  %374 = vperm.xlu0 %1467, %v371_v14   ;;  %v368_v21 = vpack.c.bf16 %v359_v19, %v351_v18  ;;  %v360_v22 = vld [vmem:[%s1785_s13 + $0x70] sm:$0xff]  ;;  %v353_v23 = vld [vmem:[%s1785_s13 + $0x38] sm:$0xff]  ;;  %vm804_vm1 = vcmp.lt.s32.totalorder %v1937_v62, 111  ;;  %vm762_vm3 = vcmp.lt.s32.totalorder %v1937_v62, 112  ;;  %vm720_vm4 = vcmp.lt.s32.totalorder %v1937_v62, 113 }
  0x37   : > { %v367_v17 = vpack.c.bf16 %v358_v16, %v350_v15  ;;  %427 = vmatpush.bf16.msra.mxu3 %v366_v13  ;;  %v361_v24 = vld [vmem:[%s1785_s13 + $0x78] sm:$0xff]  ;;  %v369_v25 = vpack.c.bf16 %v360_v22, %v352_v20  ;;  %v814_v1 = vld [vmem:[#allocation5 + $0x200] sm:$0xff]  ;;  %vm678_vm5 = vcmp.lt.s32.totalorder %v1937_v62, 127  ;;  %vm594_vm6 = vcmp.lt.s32.totalorder %v1937_v62, 15  ;;  %s1250_s11 = scalar_lea.sflag [#allocation4], %s1779_s10 }
  0x38   : > { %1359 = vmatmul.msk.bf16.vlgmr.msra.gmra.mxu0 %vm377_vm0, %v362_v12  ;;  %v370_v26 = vpack.c.bf16 %v361_v24, %v353_v23  ;;  %1360 = vmatmul.msk.bf16.vlgmr.msra.gmra.mxu1 %vm377_vm0, %v362_v12  ;;  %v730_v14 = vld [vmem:[#allocation5 + $0x180] sm:$0xff]  ;;  %vm636_vm7 = vcmp.lt.s32.totalorder %v1937_v62, 1  ;;  %vm552_vm8 = vcmp.lt.s32.totalorder %v1937_v62, 16  ;;  %vm511_vm9 = vcmp.lt.s32.totalorder %v1937_v62, 17 }
  0x39   : > { %1361 = vmatmul.msk.bf16.vlgmr.msra.gmra.mxu2 %vm377_vm0, %v362_v12  ;;  %440 = vmatpush.bf16.msrb.mxu0 %v367_v17  ;;  %v688_v22 = vld [vmem:[#allocation5 + $0x140] sm:$0xff]  ;;  %vm1045_vm11 = vcmask 64512  }
  0x3a   : > { %1362 = vmatmul.msk.bf16.vlgmr.msra.gmra.mxu3 %vm377_vm0, %v362_v12  ;;  %453 = vmatpush.bf16.msrb.mxu1 %v368_v21 }
  0x3b   : > { %466 = vmatpush.bf16.msrb.mxu2 %v369_v25  ;;  %479 = vmatpush.bf16.msrb.mxu3 %v370_v26 }
  0x48   : > { %1363 = vmatmul.msk.bf16.vlgmr.msrb.gmra.mxu0 %vm377_vm0, %v362_v12  ;;  %1364 = vmatmul.msk.bf16.vlgmr.msrb.gmra.mxu1 %vm377_vm0, %v362_v12 }
  0x49   : > { %1365 = vmatmul.msk.bf16.vlgmr.msrb.gmra.mxu2 %vm377_vm0, %v362_v12 }
  0x4a   : > { %1366 = vmatmul.msk.bf16.vlgmr.msrb.gmra.mxu3 %vm377_vm0, %v362_v12  ;;  %v772_v12 = vld [vmem:[#allocation5 + $0x1c0] sm:$0xff] }
  0xa8   : > { %v1825_v27 = vpop.permute.xlu0 %374 }
  0xb5   : > { %v390_v28 = vpop.f32.mrf.mxu0  ;;  %v403_v30 = vpop.f32.mrf.mxu1 }
  0xb6   : > { %v391_v29 = vadd.f32 %v390_v28, %v1825_v27  ;;  %v404_v31 = vadd.f32 %v403_v30, %v1825_v27 }
  0xb8   : > { %v1829_v32 = vmax.f32 %v391_v29, 0.0  ;;  %v1831_v33 = vmax.f32 %v404_v31, 0.0 }
  0xba   : > { %788 = vrot.lane.b32.xlu1 %v1829_v32, %s1623_s21  ;;  %580 = vrot.lane.b32.xlu0 %v1831_v33, %s1624_s18 }
  0xbb   : > { %790 = vrot.lane.b32.xlu2 %v1831_v33, %s1623_s21 }
  0xbc   : > { %v416_v34 = vpop.f32.mrf.mxu2 }
  0xbd   : > { %v429_v35 = vpop.f32.mrf.mxu3  ;;  %v392_v36 = vpop.f32.mrf.mxu0  ;;  %v417_v50 = vadd.f32 %v416_v34, %v1825_v27 }
  0xbe   : > { %v405_v37 = vpop.f32.mrf.mxu1  ;;  %v430_v46 = vadd.f32 %v429_v35, %v1825_v27  ;;  %v815_v36 = vld [vmem:[#allocation5 + $0x208] sm:$0xff] }
  0xbf   : > { %v1867_v51 = vmax.f32 %v417_v50, 0.0  ;;  %v816_v37 = vld [vmem:[#allocation5 + $0x210] sm:$0xff]  ;;  %v1028_v50 = vld [vmem:[%s2436_s7] sm:$0xff] }
  0xc0   : > { %v1858_v49 = vmax.f32 %v430_v46, 0.0 }
  0xc2   : > { %746 = vrot.lane.b32.xlu1 %v1829_v32, %s1625_s23  ;;  %622 = vrot.lane.b32.xlu0 %v1831_v33, %s1626_s14 }
  0xc3   : > { %495 = vrot.lane.b32.xlu2 %v1831_v33, %s1627_s15 }
  0xc4   : > { %v418_v38 = vpop.f32.mrf.mxu2 }
  0xc5   : > { %v431_v39 = vpop.f32.mrf.mxu3  ;;  %v442_v40 = vpop.f32.mrf.mxu0 }
  0xc6   : > { %v455_v41 = vpop.f32.mrf.mxu1  ;;  %v443_v52 = vadd.f32 %v442_v40, %v1825_v27 }
  0xc7   : > { %v456_v54 = vadd.f32 %v455_v41, %v1825_v27 }
  0xc8   : > { %v1894_v53 = vmax.f32 %v443_v52, 0.0  ;;  %v731_v52 = vld [vmem:[#allocation5 + $0x188] sm:$0xff] }
  0xc9   : > { %v1917_v56 = vmax.f32 %v456_v54, 0.0 }
  0xca   : > { %664 = vrot.lane.b32.xlu1 %v1831_v33, %s1628_s17  ;;  %706 = vrot.lane.b32.xlu0 %v1831_v33, %s1629_s26 }
  0xcb   : > { %538 = vrot.lane.b32.xlu2 %v1831_v33, %s1630_s22 }
  0xcc   : > { %v468_v42 = vpop.f32.mrf.mxu2 }
  0xcd   : > { %v481_v43 = vpop.f32.mrf.mxu3  ;;  %v444_v44 = vpop.f32.mrf.mxu0  ;;  %v469_v60 = vadd.f32 %v468_v42, %v1825_v27 }
  0xce   : > { %v457_v45 = vpop.f32.mrf.mxu1  ;;  %v482_v59 = vadd.f32 %v481_v43, %v1825_v27  ;;  %v773_v43 = vld [vmem:[#allocation5 + $0x1c8] sm:$0xff]  ;;  %v774_v44 = vld [vmem:[#allocation5 + $0x1d0] sm:$0xff] }
  0xcf   : > { %v1941_v0 = vmax.f32 %v469_v60, 0.0 }
  0xd0   : > { %v1939_v63 = vmax.f32 %v482_v59, 0.0 }
  0xd2   : > { %493 = vrot.lane.b32.xlu1 %v1829_v32, %s1627_s15  ;;  %662 = vrot.lane.b32.xlu0 %v1829_v32, %s1628_s17 }
  0xd3   : > { %704 = vrot.lane.b32.xlu2 %v1829_v32, %s1629_s26 }
  0xd4   : > { %v470_v47 = vpop.f32.mrf.mxu2 }
  0xd5   : > { %v483_v48 = vpop.f32.mrf.mxu3 }
  0xda   : > { %794 = vrot.lane.b32.xlu1 %v1858_v49, %s1623_s21  ;;  %578 = vrot.lane.b32.xlu0 %v1829_v32, %s1624_s18 }
  0xdb   : > { %748 = vrot.lane.b32.xlu2 %v1831_v33, %s1625_s23 }
  0xe2   : > { %750 = vrot.lane.b32.xlu1 %v1867_v51, %s1625_s23  ;;  %536 = vrot.lane.b32.xlu0 %v1829_v32, %s1630_s22 }
  0xe3   : > { %620 = vrot.lane.b32.xlu2 %v1829_v32, %s1626_s14 }
  0xea   : > { %666 = vrot.lane.b32.xlu1 %v1867_v51, %s1628_s17  ;;  %792 = vrot.lane.b32.xlu0 %v1867_v51, %s1623_s21 }
  0xeb   : > { %708 = vrot.lane.b32.xlu2 %v1867_v51, %s1629_s26 }
  0xf2   : > { %582 = vrot.lane.b32.xlu1 %v1867_v51, %s1624_s18  ;;  %497 = vrot.lane.b32.xlu0 %v1867_v51, %s1627_s15 }
  0xf3   : > { %710 = vrot.lane.b32.xlu2 %v1858_v49, %s1629_s26 }
  0xfa   : > { %624 = vrot.lane.b32.xlu1 %v1867_v51, %s1626_s14  ;;  %540 = vrot.lane.b32.xlu0 %v1867_v51, %s1630_s22 }
  0xfb   : > { %752 = vrot.lane.b32.xlu2 %v1858_v49, %s1625_s23 }
 0x102   : > { %499 = vrot.lane.b32.xlu1 %v1858_v49, %s1627_s15  ;;  %712 = vrot.lane.b32.xlu0 %v1894_v53, %s1629_s26 }
 0x103   : > { %668 = vrot.lane.b32.xlu2 %v1858_v49, %s1628_s17 }
 0x10a   : > { %542 = vrot.lane.b32.xlu1 %v1858_v49, %s1630_s22  ;;  %754 = vrot.lane.b32.xlu0 %v1894_v53, %s1625_s23 }
 0x10b   : > { %584 = vrot.lane.b32.xlu2 %v1858_v49, %s1624_s18 }
 0x112   : > { %796 = vrot.lane.b32.xlu1 %v1894_v53, %s1623_s21  ;;  %670 = vrot.lane.b32.xlu0 %v1894_v53, %s1628_s17 }
 0x113   : > { %626 = vrot.lane.b32.xlu2 %v1858_v49, %s1626_s14 }
 0x115   : > { %v1915_v55 = vpop.permute.xlu2 %790 }
 0x11a   : > { %630 = vrot.lane.b32.xlu1 %v1917_v56, %s1626_s14  ;;  %798 = vrot.lane.b32.xlu0 %v1917_v56, %s1623_s21 }
 0x11b   : > { %588 = vrot.lane.b32.xlu2 %v1917_v56, %s1624_s18 }
 0x11d   : > { %v1925_v57 = vpop.permute.xlu2 %495 }
 0x122   : > { %714 = vrot.lane.b32.xlu1 %v1917_v56, %s1629_s26  ;;  %503 = vrot.lane.b32.xlu0 %v1917_v56, %s1627_s15 }
 0x123   : > { %546 = vrot.lane.b32.xlu2 %v1917_v56, %s1630_s22 }
 0x125   : > { %v1935_v61 = vpop.permute.xlu2 %538 }
 0x12a   : > { %802 = vrot.lane.b32.xlu1 %v1939_v63, %s1623_s21  ;;  %800 = vrot.lane.b32.xlu0 %v1941_v0, %s1623_s21 }
 0x12b   : > { %716 = vrot.lane.b32.xlu2 %v1941_v0, %s1629_s26 }
 0x12c   : > { %v1950_v2 = vpop.permute.xlu1 %788  ;;  %v1952_v3 = vpop.permute.xlu0 %580 }
 0x12d   : > { %v1954_v4 = vpop.permute.xlu2 %704  ;;  %v811_v5 = vsel %vm804_vm1, %v1950_v2, %v1915_v55 }
 0x12e   : > { %v822_v6 = vmul.f32 %v814_v1, %v811_v5 }
 0x130   : > { %v862_v7 = vpack.c.bf16 %v822_v6, %v822_v6  ;;  %v689_v6 = vld [vmem:[#allocation5 + $0x148] sm:$0xff] }
 0x132   : > { %758 = vrot.lane.b32.xlu1 %v1941_v0, %s1625_s23  ;;  %v883_v8 = vsel %vm881_vm2, %v862_v7, 0  ;;  %718 = vrot.lane.b32.xlu0 %v1939_v63, %s1629_s26  ;;  %v690_v7 = vld [vmem:[#allocation5 + $0x150] sm:$0xff] }
 0x133   : > { %760 = vrot.lane.b32.xlu2 %v1939_v63, %s1625_s23  ;;  %909 = vmatpush.bf16.msra.mxu0 %v883_v8 }
 0x134   : > { %v1967_v9 = vpop.permute.xlu1 %746  ;;  %v1969_v10 = vpop.permute.xlu0 %622 }
 0x135   : > { %v749_v11 = vpop.permute.xlu2 %748 }
 0x136   : > { %v769_v13 = vsel %vm762_vm3, %v1967_v9, %v749_v11 }
 0x137   : > { %v780_v19 = vmul.f32 %v772_v12, %v769_v13 }
 0x13a   : > { %592 = vrot.lane.b32.xlu1 %v1939_v63, %s1624_s18  ;;  %634 = vrot.lane.b32.xlu0 %v1939_v63, %s1626_s14 }
 0x13b   : > { %676 = vrot.lane.b32.xlu2 %v1939_v63, %s1628_s17 }
 0x13c   : > { %v1982_v15 = vpop.permute.xlu1 %664  ;;  %v707_v16 = vpop.permute.xlu0 %706 }
 0x13d   : > { %v1984_v17 = vpop.permute.xlu2 %620  ;;  %v727_v18 = vsel %vm720_vm4, %v1954_v4, %v707_v16 }
 0x13e   : > { %v738_v20 = vmul.f32 %v730_v14, %v727_v18 }
 0x140   : > { %v854_v21 = vpack.c.bf16 %v780_v19, %v738_v20 }
 0x142   : > { %674 = vrot.lane.b32.xlu1 %v1941_v0, %s1628_s17  ;;  %590 = vrot.lane.b32.xlu0 %v1941_v0, %s1624_s18 }
 0x143   : > { %507 = vrot.lane.b32.xlu2 %v1939_v63, %s1627_s15  ;;  %910 = vmatpush.bf16.msra.mxu0 %v854_v21  ;;  %v605_v21 = vld [vmem:[#allocation5 + $0x88] sm:$0xff] }
 0x144   : > { %v1996_v23 = vpop.permute.xlu1 %493  ;;  %v1998_v24 = vpop.permute.xlu0 %662 }
 0x145   : > { %v709_v25 = vpop.permute.xlu2 %708  ;;  %v685_v26 = vsel %vm678_vm5, %v1998_v24, %v1982_v15 }
 0x146   : > { %v696_v27 = vmul.f32 %v688_v22, %v685_v26  ;;  %v726_v54 = vsel %vm720_vm4, %v707_v16, %v709_v25 }
 0x147   : > { %v739_v14 = vmul.f32 %v731_v52, %v726_v54 }
 0x148   : > { %v846_v28 = vpack.c.bf16 %v696_v27, %v1829_v32 }
 0x14a   : > { %550 = vrot.lane.b32.xlu1 %v1939_v63, %s1630_s22  ;;  %548 = vrot.lane.b32.xlu0 %v1941_v0, %s1630_s22 }
 0x14b   : > { %632 = vrot.lane.b32.xlu2 %v1941_v0, %s1626_s14  ;;  %911 = vmatpush.bf16.msra.mxu0 %v846_v28  ;;  %v647_v28 = vld [vmem:[#allocation5 + $0xc8] sm:$0xff] }
 0x14c   : > { %v2011_v29 = vpop.permute.xlu1 %794  ;;  %v2013_v30 = vpop.permute.xlu0 %578 }
 0x14d   : > { %v2015_v31 = vpop.permute.xlu2 %710  ;;  %v601_v19 = vsel %vm594_vm6, %v2013_v30, %v1952_v3 }
 0x14e   : > { %v725_v58 = vsel %vm720_vm4, %v709_v25, %v2015_v31 }
 0x152   : > { %505 = vrot.lane.b32.xlu1 %v1941_v0, %s1627_s15  ;;  %672 = vrot.lane.b32.xlu0 %v1917_v56, %s1628_s17  ;;  %s2345_s17 = scalar_lea.vmem [#allocation7], %s1356_s1  ;;  %s1394_s1 = sshll.u32 %s1700_s9, 6 }
 0x153   : > { %756 = vrot.lane.b32.xlu2 %v1917_v56, %s1625_s23  ;;  %s1262_s24 = sshll.u32 %s2345_s17, 4  ;;  %s1263_s24 = int_to_ptr.vmem [resolvable:$true] %s1262_s24 }
 0x154   : > { %v751_v32 = vpop.permute.xlu1 %750  ;;  %v2023_v34 = vpop.permute.xlu0 %536 }
 0x155   : > { %v2025_v35 = vpop.permute.xlu2 %752  ;;  %v768_v46 = vsel %vm762_vm3, %v749_v11, %v751_v32 }
 0x156   : > { %v767_v45 = vsel %vm762_vm3, %v751_v32, %v2025_v35  ;;  %v781_v1 = vmul.f32 %v773_v43, %v768_v46  ;;  %v643_v32 = vsel %vm636_vm7, %v1984_v17, %v1969_v10  ;;  %v606_v43 = vld [vmem:[#allocation5 + $0x90] sm:$0xff] }
 0x157   : > { %v782_v5 = vmul.f32 %v774_v44, %v767_v45  ;;  %v648_v45 = vld [vmem:[#allocation5 + $0xd0] sm:$0xff] }
 0x158   : > { %v855_v26 = vpack.c.bf16 %v781_v1, %v739_v14  ;;  %v871_v14 = vld [vmem:[%s2434_s5] sm:$0xff] }
 0x15a   : > { %586 = vrot.lane.b32.xlu1 %v1894_v53, %s1624_s18  ;;  %501 = vrot.lane.b32.xlu0 %v1894_v53, %s1627_s15 }
 0x15b   : > { %628 = vrot.lane.b32.xlu2 %v1894_v53, %s1626_s14 }
 0x15c   : > { %v667_v38 = vpop.permute.xlu1 %666  ;;  %v793_v39 = vpop.permute.xlu0 %792 }
 0x15d   : > { %v2033_v40 = vpop.permute.xlu2 %668  ;;  %v809_v41 = vsel %vm804_vm1, %v793_v39, %v2011_v29  ;;  %v810_v42 = vsel %vm804_vm1, %v1915_v55, %v793_v39  ;;  %v732_v55 = vld [vmem:[#allocation5 + $0x190] sm:$0xff]  ;;  %v684_v11 = vsel %vm678_vm5, %v1982_v15, %v667_v38  ;;  %v655_v39 = vmul.f32 %v647_v28, %v643_v32  ;;  %v775_v32 = vld [vmem:[#allocation5 + $0x1d8] sm:$0xff] }
 0x15e   : > { %v823_v47 = vmul.f32 %v815_v36, %v810_v42  ;;  %v824_v48 = vmul.f32 %v816_v37, %v809_v41  ;;  %v683_v8 = vsel %vm678_vm5, %v667_v38, %v2033_v40  ;;  %v740_v16 = vmul.f32 %v732_v55, %v725_v58  ;;  %v563_v41 = vld [vmem:[#allocation5 + $0x48] sm:$0xff] }
 0x15f   : > { %v697_v22 = vmul.f32 %v689_v6, %v684_v11  ;;  %v698_v25 = vmul.f32 %v690_v7, %v683_v8  ;;  %v613_v36 = vmul.f32 %v605_v21, %v601_v19  ;;  %v559_v42 = vsel %vm552_vm8, %v2023_v34, %v1935_v61 }
 0x160   : > { %v863_v59 = vpack.c.bf16 %v823_v47, %v823_v47  ;;  %v864_v60 = vpack.c.bf16 %v824_v48, %v824_v48  ;;  %v856_v27 = vpack.c.bf16 %v782_v5, %v740_v16  ;;  %v564_v47 = vld [vmem:[#allocation5 + $0x50] sm:$0xff]  ;;  %v571_v54 = vmul.f32 %v563_v41, %v559_v42 }
 0x161   : > { %v847_v37 = vpack.c.bf16 %v697_v22, %v1831_v33  ;;  %v848_v38 = vpack.c.bf16 %v698_v25, %v1867_v51  ;;  %v521_v33 = vld [vmem:[#allocation5 + $0x8] sm:$0xff]  ;;  %v518_v51 = vsel %vm511_vm9, %v1996_v23, %v1925_v57  ;;  %v817_v22 = vld [vmem:[#allocation5 + $0x218] sm:$0xff] }
 0x162   : > { %544 = vrot.lane.b32.xlu1 %v1894_v53, %s1630_s22  ;;  %1032 = vperm.xlu0 %1467, %v1028_v50   ;;  %v886_v12 = vsel %vm881_vm2, %v863_v59, 0  ;;  %v889_v13 = vsel %vm881_vm2, %v864_v60, 0  ;;  %v522_v60 = vld [vmem:[#allocation5 + $0x10] sm:$0xff]  ;;  %v529_v5 = vmul.f32 %v521_v33, %v518_v51  ;;  %s1261_s22 = scalar_lea.hbm %s2437_s8, %s1394_s1 }
 0x163   : > { %922 = vmatpush.bf16.msra.mxu1 %v886_v12  ;;  %935 = vmatpush.bf16.msra.mxu2 %v889_v13  ;;  %s1264_s29 = sshll.u32 %s1261_s22, 4  ;;  %s1265_s29 = int_to_ptr.hbm [resolvable:$true] %s1264_s29 }
 0x164   : > { %v2065_v18 = vpop.permute.xlu1 %582  ;;  %v2072_v20 = vpop.permute.xlu0 %497  ;;  %v831_v8 = vpack.c.bf16 %v571_v54, %v529_v5  ;;  %874 = vperm.xlu2 %1468, %v871_v14   ;;  %v607_v54 = vld [vmem:[#allocation5 + $0x98] sm:$0xff]  ;;  %v819_v14 = vld [vmem:[#allocation5 + $0x228] sm:$0xff]  ;;  %s1560_s16 = sshra.s32 %s1265_s29, 4  ;;  %s1561_s16 = int_to_ptr.hbm [resolvable:$true] %s1560_s16 }
 0x165   : > { %v2074_v15 = vpop.permute.xlu2 %584  ;;  %v600_v44 = vsel %vm594_vm6, %v1952_v3, %v2065_v18  ;;  %v839_v3 = vpack.c.bf16 %v655_v39, %v613_v36  ;;  %v517_v1 = vsel %vm511_vm9, %v1925_v57, %v2072_v20  ;;  %v523_v5 = vld [vmem:[#allocation5 + $0x18] sm:$0xff]  ;;  %s1562_s20 = scalar_lea.hbm %s1561_s16, 128  ;;  %p1567_p11 = scmp.lt.s32.totalorder %s1561_s16, %s2437_s8 }
 0x166   : > { %v614_v55 = vmul.f32 %v606_v43, %v600_v44  ;;  %v691_v43 = vld [vmem:[#allocation5 + $0x158] sm:$0xff]  ;;  %p1563_p1 = scmp.ne.s32.totalorder %s1561_s16, %s1562_s20 }
 0x167   : > { %923 = vmatpush.bf16.msra.mxu1 %v855_v26  ;;  %936 = vmatpush.bf16.msra.mxu2 %v856_v27 }
 0x168   : > { %p1564_p4 = pnand %p1563_p1, %p1749_p7 }
 0x16a   : > { %p1565_p8 = pneg %p1564_p4 }
 0x16b   : > { %924 = vmatpush.bf16.msra.mxu1 %v847_v37  ;;  %937 = vmatpush.bf16.msra.mxu2 %v848_v38  ;;  %v733_v38 = vld [vmem:[#allocation5 + $0x198] sm:$0xff] }
 0x16c   : > { %v625_v46 = vpop.permute.xlu1 %624  ;;  %v2096_v48 = vpop.permute.xlu0 %540 }
 0x16d   : > { %v2098_v50 = vpop.permute.xlu2 %626  ;;  %v642_v52 = vsel %vm636_vm7, %v1969_v10, %v625_v46  ;;  %v558_v58 = vsel %vm552_vm8, %v1935_v61, %v2096_v48  ;;  %v530_v10 = vmul.f32 %v522_v60, %v517_v1  ;;  %v2116_v61 = vld [vmem:[%s2433_s4] sm:$0xf] }
 0x16e   : > { %v656_v59 = vmul.f32 %v648_v45, %v642_v52  ;;  %v572_v6 = vmul.f32 %v564_v47, %v558_v58 }
 0x16f   : > { %925 = vmatpush.bf16.msra.mxu1 %v839_v3  ;;  %v641_v3 = vsel %vm636_vm7, %v625_v46, %v2098_v50 }
 0x170   : > { %v840_v7 = vpack.c.bf16 %v656_v59, %v614_v55  ;;  %v832_v12 = vpack.c.bf16 %v572_v6, %v530_v10  ;;  %v565_v59 = vld [vmem:[#allocation5 + $0x58] sm:$0xff] }
 0x172   : > { %938 = vmatpush.bf16.msra.mxu2 %v840_v7 }
 0x173   : > { %926 = vmatpush.bf16.msra.mxu1 %v831_v8 }
 0x174   : > { %v2111_v11 = vpop.permute.xlu1 %499  ;;  %v2118_v13 = vpop.permute.xlu0 %712 }
 0x175   : > { %v2120_v57 = vpop.permute.xlu2 %588  ;;  %v724_v39 = vsel %vm720_vm4, %v2015_v31, %v2118_v13  ;;  %v649_v31 = vld [vmem:[#allocation5 + $0xd8] sm:$0xff]  ;;  %v516_v46 = vsel %vm511_vm9, %v2072_v20, %v2111_v11 }
 0x176   : > { %939 = vmatpush.bf16.msra.mxu2 %v832_v12  ;;  %1368 = vmatmul.msk.bf16.vlgmr.msra.gmra.mxu1 %vm877_vm10, %v2116_v61  ;;  %v741_v45 = vmul.f32 %v733_v38, %v724_v39  ;;  %v657_v55 = vmul.f32 %v649_v31, %v641_v3  ;;  %v531_v8 = vmul.f32 %v523_v5, %v516_v46  ;;  %v779_v31 = vld [vmem:[#allocation5 + $0x1f8] sm:$0xff] }
 0x179   : > { %1369 = vmatmul.msk.bf16.vlgmr.msra.gmra.mxu2 %vm877_vm10, %v2116_v61 }
 0x17c   : > { %v2129_v16 = vpop.permute.xlu1 %542  ;;  %v2131_v19 = vpop.permute.xlu0 %754 }
 0x17d   : > { %v2133_v21 = vpop.permute.xlu2 %546  ;;  %v766_v36 = vsel %vm762_vm3, %v2025_v35, %v2131_v19  ;;  %v557_v60 = vsel %vm552_vm8, %v2096_v48, %v2129_v16  ;;  %v821_v48 = vld [vmem:[#allocation5 + $0x238] sm:$0xff] }
 0x17e   : > { %v783_v42 = vmul.f32 %v775_v32, %v766_v36  ;;  %v573_v7 = vmul.f32 %v565_v59, %v557_v60 }
 0x180   : > { %v857_v52 = vpack.c.bf16 %v783_v42, %v741_v45  ;;  %v833_v12 = vpack.c.bf16 %v573_v7, %v531_v8 }
 0x184   : > { %v2135_v25 = vpop.permute.xlu1 %796  ;;  %v2137_v26 = vpop.permute.xlu0 %670 }
 0x185   : > { %v2139_v27 = vpop.permute.xlu2 %716  ;;  %v808_v28 = vsel %vm804_vm1, %v2011_v29, %v2135_v25  ;;  %v682_v29 = vsel %vm678_vm5, %v2033_v40, %v2137_v26  ;;  %v599_v40 = vsel %vm594_vm6, %v2065_v18, %v2074_v15 }
 0x186   : > { %v825_v37 = vmul.f32 %v817_v22, %v808_v28  ;;  %v699_v33 = vmul.f32 %v691_v43, %v682_v29  ;;  %v615_v1 = vmul.f32 %v607_v54, %v599_v40  ;;  %v820_v22 = vld [vmem:[#allocation5 + $0x230] sm:$0xff]  ;;  %v737_v40 = vld [vmem:[#allocation5 + $0x1b8] sm:$0xff] }
 0x187   : > { %v736_v54 = vld [vmem:[#allocation5 + $0x1b0] sm:$0xff] }
 0x188   : > { %v865_v41 = vpack.c.bf16 %v825_v37, %v825_v37  ;;  %v849_v58 = vpack.c.bf16 %v699_v33, %v1858_v49  ;;  %v841_v49 = vpack.c.bf16 %v657_v55, %v615_v1  ;;  %v695_v1 = vld [vmem:[#allocation5 + $0x178] sm:$0xff] }
 0x18a   : > { %v892_v44 = vsel %vm881_vm2, %v865_v41, 0 }
 0x18b   : > { %948 = vmatpush.bf16.msra.mxu3 %v892_v44 }
 0x18c   : > { %v2158_v35 = vpop.permute.xlu1 %630  ;;  %v2160_v51 = vpop.permute.xlu0 %798 }
 0x18d   : > { %v761_v47 = vpop.permute.xlu2 %760 }
 0x18e   : > { %v770_v3 = vsel %vm762_vm3, %v761_v47, %v1967_v9 }
 0x18f   : > { %949 = vmatpush.bf16.msra.mxu3 %v857_v52  ;;  %v778_v52 = vld [vmem:[#allocation5 + $0x1f0] sm:$0xff] }
 0x193   : > { %950 = vmatpush.bf16.msra.mxu3 %v849_v58 }
 0x194   : > { %v715_v6 = vpop.permute.xlu1 %714  ;;  %v2178_v18 = vpop.permute.xlu0 %503 }
 0x195   : > { %v2180_v10 = vpop.permute.xlu2 %676 }
 0x196   : > { %v686_v5 = vsel %vm678_vm5, %v2180_v10, %v1998_v24  ;;  %v723_v24 = vsel %vm720_vm4, %v2118_v13, %v715_v6 }
 0x197   : > { %951 = vmatpush.bf16.msra.mxu3 %v841_v49  ;;  %v787_v49 = vmul.f32 %v779_v31, %v770_v3 }
 0x19b   : > { %952 = vmatpush.bf16.msra.mxu3 %v833_v12 }
 0x19c   : > { %v803_v28 = vpop.permute.xlu1 %802  ;;  %v801_v32 = vpop.permute.xlu0 %800 }
 0x19d   : > { %v2182_v36 = vpop.permute.xlu2 %507  ;;  %v812_v20 = vsel %vm804_vm1, %v803_v28, %v1950_v2  ;;  %v806_v37 = vsel %vm804_vm1, %v2160_v51, %v801_v32  ;;  %v805_v38 = vsel %vm804_vm1, %v801_v32, %v803_v28  ;;  %v735_v28 = vld [vmem:[#allocation5 + $0x1a8] sm:$0xff]  ;;  %v722_v32 = vsel %vm720_vm4, %v715_v6, %v2139_v27 }
 0x19e   : > { %v829_v39 = vmul.f32 %v821_v48, %v812_v20  ;;  %1370 = vmatmul.msk.bf16.vlgmr.msra.gmra.mxu3 %vm877_vm10, %v2116_v61  ;;  %v827_v41 = vmul.f32 %v819_v14, %v806_v37  ;;  %v828_v42 = vmul.f32 %v820_v22, %v805_v38  ;;  %v703_v48 = vmul.f32 %v695_v1, %v686_v5  ;;  %v734_v22 = vld [vmem:[#allocation5 + $0x1a0] sm:$0xff]  ;;  %v777_v37 = vld [vmem:[#allocation5 + $0x1e8] sm:$0xff] }
 0x19f   : > { %v776_v20 = vld [vmem:[#allocation5 + $0x1e0] sm:$0xff]  ;;  %v2222_v13 = vmul.f32 %v734_v22, %v723_v24 }
 0x1a0   : > { %v869_v43 = vpack.c.bf16 %v829_v39, %v829_v39  ;;  %v867_v29 = vpack.c.bf16 %v827_v41, %v827_v41  ;;  %v868_v44 = vpack.c.bf16 %v828_v42, %v828_v42  ;;  %v604_v42 = vld [vmem:[#allocation5 + $0x80] sm:$0xff] }
 0x1a1   : > { %v818_v5 = vld [vmem:[#allocation5 + $0x220] sm:$0xff] }
 0x1a2   : > { %v904_v45 = vsel %vm881_vm2, %v869_v43, 0  ;;  %v898_v2 = vsel %vm881_vm2, %v867_v29, 0  ;;  %v901_v33 = vsel %vm881_vm2, %v868_v44, 0  ;;  %v853_v29 = vpack.c.bf16 %v703_v48, %v1939_v63  ;;  %v652_v48 = vld [vmem:[#allocation5 + $0xf0] sm:$0xff]  ;;  %v520_v24 = vld [vmem:[#allocation5] sm:$0xff] }
 0x1a3   : > { %1000 = vmatpush.bf16.msrb.mxu3 %v904_v45  ;;  %974 = vmatpush.bf16.msrb.mxu1 %v898_v2  ;;  %v743_v45 = vmul.f32 %v735_v28, %v722_v32 }
 0x1a4   : > { %987 = vmatpush.bf16.msrb.mxu2 %v901_v33  ;;  %v759_v55 = vpop.permute.xlu1 %758  ;;  %v719_v58 = vpop.permute.xlu0 %718 }
 0x1a5   : > { %v633_v59 = vpop.permute.xlu2 %632  ;;  %v763_v60 = vsel %vm762_vm3, %v759_v55, %v761_v47  ;;  %v721_v9 = vsel %vm720_vm4, %v2139_v27, %v719_v58  ;;  %v728_v46 = vsel %vm720_vm4, %v719_v58, %v1954_v4  ;;  %v646_v4 = vld [vmem:[#allocation5 + $0xc0] sm:$0xff]  ;;  %v694_v58 = vld [vmem:[#allocation5 + $0x170] sm:$0xff] }
 0x1a6   : > { %v786_v7 = vmul.f32 %v778_v52, %v763_v60  ;;  %v744_v8 = vmul.f32 %v736_v54, %v721_v9  ;;  %v745_v12 = vmul.f32 %v737_v40, %v728_v46  ;;  %v611_v40 = vld [vmem:[#allocation5 + $0xb8] sm:$0xff]  ;;  %v807_v9 = vsel %vm804_vm1, %v2135_v25, %v2160_v51  ;;  %v562_v51 = vld [vmem:[#allocation5 + $0x40] sm:$0xff] }
 0x1a7   : > { %v519_v25 = vsel %vm511_vm9, %v2182_v36, %v1996_v23 }
 0x1a8   : > { %v860_v47 = vpack.c.bf16 %v786_v7, %v744_v8  ;;  %v861_v14 = vpack.c.bf16 %v787_v49, %v745_v12  ;;  %v610_v7 = vld [vmem:[#allocation5 + $0xb0] sm:$0xff] }
 0x1aa   : > { %988 = vmatpush.bf16.msrb.mxu2 %v860_v47  ;;  %1001 = vmatpush.bf16.msrb.mxu3 %v861_v14  ;;  %v826_v14 = vmul.f32 %v818_v5, %v807_v9 }
 0x1ac   : > { %v593_v38 = vpop.permute.xlu1 %592  ;;  %v635_v39 = vpop.permute.xlu0 %634 }
 0x1ad   : > { %v757_v41 = vpop.permute.xlu2 %756  ;;  %v602_v43 = vsel %vm594_vm6, %v593_v38, %v2013_v30  ;;  %v644_v44 = vsel %vm636_vm7, %v635_v39, %v1984_v17  ;;  %v653_v17 = vld [vmem:[#allocation5 + $0xf8] sm:$0xff]  ;;  %v637_v54 = vsel %vm636_vm7, %v633_v59, %v635_v39 }
 0x1ae   : > { %v764_v27 = vsel %vm762_vm3, %v757_v41, %v759_v55  ;;  %v765_v6 = vsel %vm762_vm3, %v2131_v19, %v757_v41  ;;  %v654_v2 = vmul.f32 %v646_v4, %v644_v44  ;;  %1002 = vmatpush.bf16.msrb.mxu3 %v853_v29  ;;  %v612_v63 = vmul.f32 %v604_v42, %v602_v43  ;;  %v568_v42 = vld [vmem:[#allocation5 + $0x70] sm:$0xff]  ;;  %v569_v43 = vld [vmem:[#allocation5 + $0x78] sm:$0xff] }
 0x1af   : > { %v2232_v33 = vmul.f32 %v776_v20, %v765_v6  ;;  %v785_v30 = vmul.f32 %v777_v37, %v764_v27  ;;  %v661_v46 = vmul.f32 %v653_v17, %v637_v54  ;;  %v866_v37 = vpack.c.bf16 %v826_v14, %v826_v14  ;;  %v527_v27 = vld [vmem:[#allocation5 + $0x38] sm:$0xff]  ;;  %v692_v6 = vld [vmem:[#allocation5 + $0x160] sm:$0xff] }
 0x1b0   : > { %v838_v3 = vpack.c.bf16 %v654_v2, %v612_v63 }
 0x1b1   : > { %v859_v52 = vpack.c.bf16 %v785_v30, %v743_v45  ;;  %v858_v31 = vpack.c.bf16 %v2232_v33, %v2222_v13  ;;  %v895_v44 = vsel %vm881_vm2, %v866_v37, 0  ;;  %v693_v45 = vld [vmem:[#allocation5 + $0x168] sm:$0xff]  ;;  %v608_v33 = vld [vmem:[#allocation5 + $0xa0] sm:$0xff] }
 0x1b2   : > { %912 = vmatpush.bf16.msra.mxu0 %v838_v3 }
 0x1b3   : > { %975 = vmatpush.bf16.msrb.mxu1 %v859_v52 }
 0x1b4   : > { %v675_v19 = vpop.permute.xlu1 %674  ;;  %v591_v55 = vpop.permute.xlu0 %590 }
 0x1b5   : > { %v679_v60 = vsel %vm678_vm5, %v675_v19, %v2180_v10  ;;  %v595_v1 = vsel %vm594_vm6, %v591_v55, %v593_v38  ;;  %v596_v49 = vsel %vm594_vm6, %v2120_v57, %v591_v55  ;;  %v638_v10 = vsel %vm636_vm7, %v2158_v35, %v633_v59 }
 0x1b6   : > { %v619_v8 = vmul.f32 %v611_v40, %v595_v1  ;;  %v702_v12 = vmul.f32 %v694_v58, %v679_v60  ;;  %v618_v22 = vmul.f32 %v610_v7, %v596_v49  ;;  %v660_v32 = vmul.f32 %v652_v48, %v638_v10  ;;  %v651_v49 = vld [vmem:[#allocation5 + $0xe8] sm:$0xff] }
 0x1b7   : > { %v528_v38 = vmul.f32 %v520_v24, %v519_v25  ;;  %v566_v24 = vld [vmem:[#allocation5 + $0x60] sm:$0xff]  ;;  %v567_v25 = vld [vmem:[#allocation5 + $0x68] sm:$0xff] }
 0x1b8   : > { %v845_v47 = vpack.c.bf16 %v661_v46, %v619_v8  ;;  %v852_v28 = vpack.c.bf16 %v702_v12, %v1941_v0  ;;  %v844_v0 = vpack.c.bf16 %v660_v32, %v618_v22  ;;  %v524_v22 = vld [vmem:[#allocation5 + $0x20] sm:$0xff] }
 0x1ba   : > { %1003 = vmatpush.bf16.msrb.mxu3 %v845_v47  ;;  %989 = vmatpush.bf16.msrb.mxu2 %v852_v28 }
 0x1bc   : > { %v551_v4 = vpop.permute.xlu1 %550  ;;  %v549_v20 = vpop.permute.xlu0 %548 }
 0x1bd   : > { %v560_v59 = vsel %vm552_vm8, %v551_v4, %v2023_v34  ;;  %v554_v23 = vsel %vm552_vm8, %v2133_v21, %v549_v20  ;;  %v553_v29 = vsel %vm552_vm8, %v549_v20, %v551_v4  ;;  %v526_v34 = vld [vmem:[#allocation5 + $0x30] sm:$0xff] }
 0x1be   : > { %v570_v39 = vmul.f32 %v562_v51, %v560_v59  ;;  %990 = vmatpush.bf16.msrb.mxu2 %v844_v0  ;;  %v576_v30 = vmul.f32 %v568_v42, %v554_v23  ;;  %v577_v63 = vmul.f32 %v569_v43, %v553_v29  ;;  %v1393_v42 = vld [vmem:[%s2435_s6] sm:$0xff] }
 0x1c0   : > { %v830_v41 = vpack.c.bf16 %v570_v39, %v528_v38 }
 0x1c2   : > { %913 = vmatpush.bf16.msra.mxu0 %v830_v41 }
 0x1c4   : > { %v506_v2 = vpop.permute.xlu1 %505  ;;  %v673_v52 = vpop.permute.xlu0 %672 }
 0x1c5   : > { %v512_v3 = vsel %vm511_vm9, %v506_v2, %v2182_v36  ;;  %v513_v17 = vsel %vm511_vm9, %v2178_v18, %v506_v2  ;;  %1367 = vmatmul.msk.bf16.vlgmr.msra.gmra.mxu0 %vm877_vm10, %v2116_v61  ;;  %v680_v54 = vsel %vm678_vm5, %v673_v52, %v675_v19  ;;  %v681_v40 = vsel %vm678_vm5, %v2137_v26, %v673_v52  ;;  %v629_v36 = vpop.permute.xlu2 %628  ;;  %v650_v19 = vld [vmem:[#allocation5 + $0xe0] sm:$0xff] }
 0x1c6   : > { %961 = vmatpush.bf16.msrb.mxu0 %v895_v44  ;;  %v534_v55 = vmul.f32 %v526_v34, %v513_v17  ;;  %v535_v58 = vmul.f32 %v527_v27, %v512_v3  ;;  %v700_v60 = vmul.f32 %v692_v6, %v681_v40  ;;  %v701_v1 = vmul.f32 %v693_v45, %v680_v54  ;;  %v1029_v3 = vld [vmem:[%s2436_s7 + $0x8] sm:$0xff] }
 0x1c7   : > { %v639_v26 = vsel %vm636_vm7, %v629_v36, %v2158_v35  ;;  %v640_v13 = vsel %vm636_vm7, %v2098_v50, %v629_v36  ;;  %1037 = vperm.xlu1 %1469, %v1029_v3  }
 0x1c8   : > { %v836_v5 = vpack.c.bf16 %v576_v30, %v534_v55  ;;  %v837_v9 = vpack.c.bf16 %v577_v63, %v535_v58  ;;  %v851_v46 = vpack.c.bf16 %v701_v1, %v1917_v56  ;;  %v850_v7 = vpack.c.bf16 %v700_v60, %v1894_v53 }
 0x1c9   : > { %v658_v50 = vmul.f32 %v650_v19, %v640_v13  ;;  %v659_v35 = vmul.f32 %v651_v49, %v639_v26 }
 0x1ca   : > { %962 = vmatpush.bf16.msrb.mxu0 %v858_v31  ;;  %991 = vmatpush.bf16.msrb.mxu2 %v836_v5  ;;  %v609_v31 = vld [vmem:[#allocation5 + $0xa8] sm:$0xff] }
 0x1cb   : > { %1004 = vmatpush.bf16.msrb.mxu3 %v837_v9  ;;  %976 = vmatpush.bf16.msrb.mxu1 %v851_v46 }
 0x1cc   : > { %v587_v8 = vpop.permute.xlu1 %586  ;;  %v502_v10 = vpop.permute.xlu0 %501 }
 0x1cd   : > { %v597_v53 = vsel %vm594_vm6, %v587_v8, %v2120_v57  ;;  %v598_v56 = vsel %vm594_vm6, %v2074_v15, %v587_v8  ;;  %1373 = vmatmul.msk.bf16.vlgmr.msrb.gmra.mxu2 %vm877_vm10, %v2116_v61  ;;  %v525_v57 = vld [vmem:[#allocation5 + $0x28] sm:$0xff]  ;;  %v514_v15 = vsel %vm511_vm9, %v502_v10, %v2178_v18  ;;  %v515_v28 = vsel %vm511_vm9, %v2111_v11, %v502_v10  ;;  %v875_v11 = vpop.permute.xlu2 %874 }
 0x1ce   : > { %963 = vmatpush.bf16.msrb.mxu0 %v850_v7  ;;  %1374 = vmatmul.msk.bf16.vlgmr.msrb.gmra.mxu3 %vm877_vm10, %v2116_v61  ;;  %v616_v12 = vmul.f32 %v608_v33, %v598_v56  ;;  %v617_v48 = vmul.f32 %v609_v31, %v597_v53  ;;  %v532_v20 = vmul.f32 %v524_v22, %v515_v28 }
 0x1cf   : > { %v533_v59 = vmul.f32 %v525_v57, %v514_v15 }
 0x1d0   : > { %v842_v47 = vpack.c.bf16 %v658_v50, %v616_v12  ;;  %v843_v14 = vpack.c.bf16 %v659_v35, %v617_v48 }
 0x1d2   : > { %964 = vmatpush.bf16.msrb.mxu0 %v842_v47  ;;  %977 = vmatpush.bf16.msrb.mxu1 %v843_v14 }
 0x1d4   : > { %v545_v51 = vpop.permute.xlu1 %544  ;;  %v2339_v15 = vpop.permute.xlu0 %1032 }
 0x1d5   : > { %v555_v32 = vsel %vm552_vm8, %v545_v51, %v2133_v21  ;;  %v556_v4 = vsel %vm552_vm8, %v2129_v16, %v545_v51  ;;  %v1470_v51 = vld [vmem:[%s1785_s13 + $0x8] sm:$0xff] }
 0x1d6   : > { %v574_v37 = vmul.f32 %v566_v24, %v556_v4  ;;  %v575_v38 = vmul.f32 %v567_v25, %v555_v32 }
 0x1d8   : > { %v834_v18 = vpack.c.bf16 %v574_v37, %v532_v20  ;;  %v835_v39 = vpack.c.bf16 %v575_v38, %v533_v59  ;;  %v1471_v38 = vld [vmem:[%s1785_s13 + $0x10] sm:$0xff] }
 0x1da   : > { %965 = vmatpush.bf16.msrb.mxu0 %v834_v18  ;;  %978 = vmatpush.bf16.msrb.mxu1 %v835_v39 }
 0x1dd   : > { %1371 = vmatmul.msk.bf16.vlgmr.msrb.gmra.mxu0 %vm877_vm10, %v2116_v61  ;;  %1372 = vmatmul.msk.bf16.vlgmr.msrb.gmra.mxu1 %vm877_vm10, %v2116_v61 }
 0x1f3   : > { %v928_v21 = vpop.f32.mrf.mxu1 }
 0x1f4   : > { %v929_v0 = vadd.f32 %v928_v21, %v875_v11 }
 0x1f6   : > { %v1011_v41 = vmax.f32 %v929_v0, 0.0 }
 0x1f8   : > { %v1021_v62 = vpack.c.bf16 %v1011_v41, %v1011_v41 }
 0x1fa   : > { %v1053_v16 = vsel %vm881_vm2, %v1021_v62, 0 }
 0x1fb   : > { %1094 = vmatpush.bf16.msra.mxu1 %v1053_v16  ;;  %v930_v43 = vpop.f32.mrf.mxu1  ;;  %v1472_v16 = vld [vmem:[%s1785_s13 + $0x18] sm:$0xff] }
 0x1fc   : > { %v941_v23 = vpop.f32.mrf.mxu2 }
 0x1fd   : > { %v942_v29 = vadd.f32 %v941_v23, %v875_v11 }
 0x1fe   : > { %1380 = vmatmul.msk.bf16.vlgmr.msra.gmra.mxu1 %vm1045_vm11, %v1393_v42 }
 0x1ff   : > { %v1012_v44 = vmax.f32 %v942_v29, 0.0 }
 0x201   : > { %v1022_v61 = vpack.c.bf16 %v1012_v44, %v1012_v44 }
 0x203   : > { %v1056_v34 = vsel %vm881_vm2, %v1022_v61, 0 }
 0x204   : > { %1108 = vmatpush.bf16.msra.mxu2 %v1056_v34  ;;  %v943_v27 = vpop.f32.mrf.mxu2 }
 0x207   : > { %1381 = vmatmul.msk.bf16.vlgmr.msra.gmra.mxu2 %vm1045_vm11, %v1393_v42 }
 0x221   : > { %v954_v6 = vpop.f32.mrf.mxu3 }
 0x222   : > { %v955_v45 = vadd.f32 %v954_v6, %v875_v11 }
 0x224   : > { %v1013_v2 = vmax.f32 %v955_v45, 0.0  ;;  %v1473_v45 = vld [vmem:[%s1785_s13 + $0x48] sm:$0xff] }
 0x226   : > { %v1023_v30 = vpack.c.bf16 %v1013_v2, %v1013_v2 }
 0x228   : > { %v1059_v63 = vsel %vm881_vm2, %v1023_v30, 0  ;;  %v1474_v30 = vld [vmem:[%s1785_s13 + $0x50] sm:$0xff] }
 0x229   : > { %1122 = vmatpush.bf16.msra.mxu3 %v1059_v63  ;;  %v956_v52 = vpop.f32.mrf.mxu3 }
 0x22c   : > { %1382 = vmatmul.msk.bf16.vlgmr.msra.gmra.mxu3 %vm1045_vm11, %v1393_v42 }
 0x239   : > { %v2353_v23 = vpop.permute.xlu1 %1037 }
 0x242   : > { %v915_v17 = vpop.f32.mrf.mxu0 }
 0x243   : > { %v916_v54 = vadd.f32 %v915_v17, %v875_v11 }
 0x245   : > { %v1010_v40 = vmax.f32 %v916_v54, 0.0  ;;  %v1475_v54 = vld [vmem:[%s1785_s13 + $0x58] sm:$0xff] }
 0x247   : > { %v1020_v55 = vpack.c.bf16 %v1010_v40, %v1010_v40 }
 0x249   : > { %v1050_v58 = vsel %vm881_vm2, %v1020_v55, 0 }
 0x24a   : > { %v917_v60 = vpop.f32.mrf.mxu0  ;;  %1080 = vmatpush.bf16.msra.mxu0 %v1050_v58 }
 0x24d   : > { %1379 = vmatmul.msk.bf16.vlgmr.msra.gmra.mxu0 %vm1045_vm11, %v1393_v42 }
 0x250   : > { %v993_v1 = vpop.f32.mrf.mxu2 }
 0x251   : > { %v1006_v36 = vpop.f32.mrf.mxu3  ;;  %v994_v5 = vadd.f32 %v993_v1, %v875_v11 }
 0x252   : > { %v1007_v9 = vadd.f32 %v1006_v36, %v875_v11  ;;  %v1476_v36 = vld [vmem:[%s1785_s13] sm:$0xff] }
 0x253   : > { %v1016_v46 = vmax.f32 %v994_v5, 0.0 }
 0x254   : > { %v1017_v7 = vmax.f32 %v1007_v9, 0.0 }
 0x255   : > { %v1026_v19 = vpack.c.bf16 %v1016_v46, %v1016_v46 }
 0x256   : > { %v1027_v49 = vpack.c.bf16 %v1017_v7, %v1017_v7 }
 0x257   : > { %v1068_v26 = vsel %vm881_vm2, %v1026_v19, 0 }
 0x258   : > { %v1071_v13 = vsel %vm881_vm2, %v1027_v49, 0  ;;  %v995_v33 = vpop.f32.mrf.mxu2  ;;  %1164 = vmatpush.bf16.msrb.mxu2 %v1068_v26  ;;  %v1477_v49 = vld [vmem:[%s1785_s13 + $0x40] sm:$0xff] }
 0x259   : > { %v1008_v31 = vpop.f32.mrf.mxu3  ;;  %1178 = vmatpush.bf16.msrb.mxu3 %v1071_v13 }
 0x25a   : > { %v967_v8 = vpop.f32.mrf.mxu0  ;;  %v980_v53 = vpop.f32.mrf.mxu1 }
 0x25b   : > { %v968_v56 = vadd.f32 %v967_v8, %v875_v11  ;;  %v981_v50 = vadd.f32 %v980_v53, %v875_v11  ;;  %1385 = vmatmul.msk.bf16.vlgmr.msrb.gmra.mxu2 %vm1045_vm11, %v1393_v42 }
 0x25c   : > { %1386 = vmatmul.msk.bf16.vlgmr.msrb.gmra.mxu3 %vm1045_vm11, %v1393_v42 }
 0x25d   : > { %v1014_v35 = vmax.f32 %v968_v56, 0.0  ;;  %v1015_v12 = vmax.f32 %v981_v50, 0.0 }
 0x25f   : > { %v1024_v48 = vpack.c.bf16 %v1014_v35, %v1014_v35  ;;  %v1025_v10 = vpack.c.bf16 %v1015_v12, %v1015_v12 }
 0x261   : > { %v1062_v47 = vsel %vm881_vm2, %v1024_v48, 0  ;;  %v1065_v14 = vsel %vm881_vm2, %v1025_v10, 0  ;;  %v1478_v48 = vld [vmem:[%s1785_s13 + $0x30] sm:$0xff] }
 0x262   : > { %v969_v22 = vpop.f32.mrf.mxu0  ;;  %v982_v57 = vpop.f32.mrf.mxu1  ;;  %1136 = vmatpush.bf16.msrb.mxu0 %v1062_v47  ;;  %1150 = vmatpush.bf16.msrb.mxu1 %v1065_v14  ;;  %v1479_v47 = vld [vmem:[%s1785_s13 + $0x38] sm:$0xff] }
 0x265   : > { %1383 = vmatmul.msk.bf16.vlgmr.msrb.gmra.mxu0 %vm1045_vm11, %v1393_v42  ;;  %1384 = vmatmul.msk.bf16.vlgmr.msrb.gmra.mxu1 %vm1045_vm11, %v1393_v42 }
 0x27b   : > { %v1096_v28 = vpop.f32.mrf.mxu1 }
 0x27c   : > { %v1097_v24 = vadd.f32 %v1096_v28, %v2339_v15 }
 0x27e   : > { %v1186_v25 = vmax.f32 %v1097_v24, 0.0 }
 0x280   : > { %v1202_v32 = vadd.f32 %v1470_v51, %v1186_v25 }
 0x282   : > { %v1218_v4 = vmax.f32 %v1202_v32, 0.0 }
 0x283   : > { %v1098_v62 = vpop.f32.mrf.mxu1 }
 0x284   : > { %1234 = vst [vmem:[%s2345_s17 + $0x8] sm:$0xff] %v1218_v4  ;;  %v1099_v43 = vadd.f32 %v1098_v62, %v2353_v23 }
 0x286   : > { %v1194_v34 = vmax.f32 %v1099_v43, 0.0  ;;  %v1482_v43 = vld [vmem:[%s1785_s13 + $0x70] sm:$0xff] }
 0x288   : > { %v1210_v2 = vadd.f32 %v1473_v45, %v1194_v34 }
 0x28a   : > { %v1110_v20 = vpop.f32.mrf.mxu2  ;;  %v1226_v3 = vmax.f32 %v1210_v2, 0.0 }
 0x28b   : > { %v1111_v59 = vadd.f32 %v1110_v20, %v2339_v15  ;;  %v1480_v20 = vld [vmem:[%s1785_s13 + $0x20] sm:$0xff] }
 0x28c   : > { %1242 = vst [vmem:[%s2345_s17 + $0x48] sm:$0xff] %v1226_v3 }
 0x28d   : > { %v1187_v37 = vmax.f32 %v1111_v59, 0.0 }
 0x28f   : > { %v1203_v18 = vadd.f32 %v1471_v38, %v1187_v37  ;;  %v1481_v37 = vld [vmem:[%s1785_s13 + $0x28] sm:$0xff] }
 0x291   : > { %v1219_v39 = vmax.f32 %v1203_v18, 0.0 }
 0x292   : > { %v1112_v41 = vpop.f32.mrf.mxu2 }
 0x293   : > { %1235 = vst [vmem:[%s2345_s17 + $0x10] sm:$0xff] %v1219_v39  ;;  %v1113_v29 = vadd.f32 %v1112_v41, %v2353_v23 }
 0x295   : > { %v1195_v27 = vmax.f32 %v1113_v29, 0.0 }
 0x297   : > { %v1211_v63 = vadd.f32 %v1474_v30, %v1195_v27  ;;  %v1485_v30 = vld [vmem:[%s1785_s13 + $0x68] sm:$0xff] }
 0x299   : > { %v1227_v17 = vmax.f32 %v1211_v63, 0.0 }
 0x29b   : > { %1243 = vst [vmem:[%s2345_s17 + $0x50] sm:$0xff] %v1227_v17 }
 0x2af   : > { %v1124_v11 = vpop.f32.mrf.mxu3 }
 0x2b0   : > { %v1125_v21 = vadd.f32 %v1124_v11, %v2339_v15 }
 0x2b2   : > { %v1188_v0 = vmax.f32 %v1125_v21, 0.0 }
 0x2b4   : > { %v1204_v42 = vadd.f32 %v1472_v16, %v1188_v0 }
 0x2b6   : > { %v1220_v44 = vmax.f32 %v1204_v42, 0.0 }
 0x2b7   : > { %v1126_v61 = vpop.f32.mrf.mxu3 }
 0x2b8   : > { %1236 = vst [vmem:[%s2345_s17 + $0x18] sm:$0xff] %v1220_v44  ;;  %v1127_v6 = vadd.f32 %v1126_v61, %v2353_v23  ;;  %v1483_v44 = vld [vmem:[%s1785_s13 + $0x78] sm:$0xff] }
 0x2ba   : > { %v1196_v52 = vmax.f32 %v1127_v6, 0.0 }
 0x2bc   : > { %v1212_v40 = vadd.f32 %v1475_v54, %v1196_v52 }
 0x2be   : > { %v1228_v55 = vmax.f32 %v1212_v40, 0.0 }
 0x2c0   : > { %1244 = vst [vmem:[%s2345_s17 + $0x58] sm:$0xff] %v1228_v55 }
 0x2ca   : > { %v1082_v58 = vpop.f32.mrf.mxu0 }
 0x2cb   : > { %v1083_v60 = vadd.f32 %v1082_v58, %v2339_v15 }
 0x2cd   : > { %v1185_v1 = vmax.f32 %v1083_v60, 0.0 }
 0x2cf   : > { %v1201_v5 = vadd.f32 %v1476_v36, %v1185_v1 }
 0x2d1   : > { %v1217_v9 = vmax.f32 %v1201_v5, 0.0 }
 0x2d2   : > { %v1084_v46 = vpop.f32.mrf.mxu0 }
 0x2d3   : > { %1233 = vst [vmem:[%s2345_s17] sm:$0xff] %v1217_v9  ;;  %v1085_v7 = vadd.f32 %v1084_v46, %v2353_v23 }
 0x2d5   : > { %v1193_v19 = vmax.f32 %v1085_v7, 0.0 }
 0x2d7   : > { %v1209_v26 = vadd.f32 %v1477_v49, %v1193_v19 }
 0x2d9   : > { %v1225_v13 = vmax.f32 %v1209_v26, 0.0 }
 0x2db   : > { %1241 = vst [vmem:[%s2345_s17 + $0x40] sm:$0xff] %v1225_v13 }
 0x2de   : > { %v1166_v33 = vpop.f32.mrf.mxu2 }
 0x2df   : > { %v1180_v31 = vpop.f32.mrf.mxu3  ;;  %v1167_v8 = vadd.f32 %v1166_v33, %v2339_v15 }
 0x2e0   : > { %v1181_v53 = vadd.f32 %v1180_v31, %v2339_v15 }
 0x2e1   : > { %v1191_v56 = vmax.f32 %v1167_v8, 0.0 }
 0x2e2   : > { %v1192_v50 = vmax.f32 %v1181_v53, 0.0  ;;  %v1138_v35 = vpop.f32.mrf.mxu0  ;;  %v1152_v12 = vpop.f32.mrf.mxu1 }
 0x2e3   : > { %v1207_v10 = vadd.f32 %v1478_v48, %v1191_v56  ;;  %v1139_v22 = vadd.f32 %v1138_v35, %v2339_v15  ;;  %v1153_v57 = vadd.f32 %v1152_v12, %v2339_v15 }
 0x2e4   : > { %v1208_v14 = vadd.f32 %v1479_v47, %v1192_v50 }
 0x2e5   : > { %v1223_v28 = vmax.f32 %v1207_v10, 0.0  ;;  %v1189_v25 = vmax.f32 %v1139_v22, 0.0  ;;  %v1190_v51 = vmax.f32 %v1153_v57, 0.0 }
 0x2e6   : > { %v1224_v24 = vmax.f32 %v1208_v14, 0.0  ;;  %v1168_v32 = vpop.f32.mrf.mxu2 }
 0x2e7   : > { %v1182_v4 = vpop.f32.mrf.mxu3  ;;  %1239 = vst [vmem:[%s2345_s17 + $0x30] sm:$0xff] %v1223_v28  ;;  %v1205_v59 = vadd.f32 %v1480_v20, %v1189_v25  ;;  %v1206_v38 = vadd.f32 %v1481_v37, %v1190_v51  ;;  %v1169_v18 = vadd.f32 %v1168_v32, %v2353_v23 }
 0x2e8   : > { %v1183_v39 = vadd.f32 %v1182_v4, %v2353_v23  ;;  %1240 = vst [vmem:[%s2345_s17 + $0x38] sm:$0xff] %v1224_v24 }
 0x2e9   : > { %v1221_v15 = vmax.f32 %v1205_v59, 0.0  ;;  %v1222_v11 = vmax.f32 %v1206_v38, 0.0  ;;  %v1199_v21 = vmax.f32 %v1169_v18, 0.0 }
 0x2ea   : > { %v1200_v0 = vmax.f32 %v1183_v39, 0.0  ;;  %v1140_v41 = vpop.f32.mrf.mxu0  ;;  %v1154_v62 = vpop.f32.mrf.mxu1 }
 0x2eb   : > { %1237 = vst [vmem:[%s2345_s17 + $0x20] sm:$0xff] %v1221_v15  ;;  %v1141_v16 = vadd.f32 %v1140_v41, %v2353_v23  ;;  %v1155_v42 = vadd.f32 %v1154_v62, %v2353_v23  ;;  %v1215_v29 = vadd.f32 %v1482_v43, %v1199_v21  ;;  %v1484_v23 = vld [vmem:[%s1785_s13 + $0x60] sm:$0xff]  ;;  %s1566_s13 = scalar_lea.hbm %s2437_s8, 256 }
 0x2ec   : > { %v1216_v61 = vadd.f32 %v1483_v44, %v1200_v0  ;;  %1238 = vst [vmem:[%s2345_s17 + $0x28] sm:$0xff] %v1222_v11  ;;  %p1568_p9 = scmp.lt.s32.totalorder %s1566_s13, %s1562_s20 }
 0x2ed   : > { %v1197_v34 = vmax.f32 %v1141_v16, 0.0  ;;  %v1198_v27 = vmax.f32 %v1155_v42, 0.0  ;;  %v1231_v6 = vmax.f32 %v1215_v29, 0.0 }
 0x2ee   : > { %v1232_v45 = vmax.f32 %v1216_v61, 0.0  ;;  %p1569_p2 = por %p1568_p9, %p1567_p11 }
 0x2ef   : > { %v1213_v2 = vadd.f32 %v1484_v23, %v1197_v34  ;;  %v1214_v63 = vadd.f32 %v1485_v30, %v1198_v27  ;;  %1247 = vst [vmem:[%s2345_s17 + $0x70] sm:$0xff] %v1231_v6 }
 0x2f0   : > { %1248 = vst [vmem:[%s2345_s17 + $0x78] sm:$0xff] %v1232_v45  ;;  %p1570_p10 = pnand %p1569_p2, %p1565_p8 }
 0x2f1   : > { %v1229_v52 = vmax.f32 %v1213_v2, 0.0  ;;  %v1230_v3 = vmax.f32 %v1214_v63, 0.0 }
 0x2f3   : > { %1245 = vst [vmem:[%s2345_s17 + $0x60] sm:$0xff] %v1229_v52 }
 0x2f4   : > { %1246 = vst [vmem:[%s2345_s17 + $0x68] sm:$0xff] %v1230_v3 }
 0x2f5   : > { %1573 = shalt.err (!%p1570_p10)
}
 0x2f6   : > { %s1631_s10 = smov 1024   ;;  %s1632_s15 = smov 2048  }
 0x2f7   : > { %s1633_s17 = smov 64  }
 0x2f8   : > { %1401 = dma.vmem_to_hbm [thread:$0]  (%p1749_p7), %s1263_s24, 2048, %s1265_s29, %s1250_s11, %s1631_s10, %s1632_s15, %s1633_s17  }
 0x2f9 PF: > { %s1279_s1 = sand.u32 1, %s1604_s27   ;;  %p2452_p12 = scmp.ge.s32.totalorder %s1616_s30, 2 }
 0x2fa   : > { %s1280_s9 = scalar_lea.sflag [#allocation4], %s1279_s1 }
 0x2fb   : > { %p1412_p13 = pnand %p2452_p12, %p1714_p6 }
 0x2fd   : > { %p1413_p0 = pneg %p1412_p13 }
 0x2ff   : > { %1599 = dma.done.wait (%p1413_p0), %s1280_s9, 2048  }
 0x300   : > { %1601 = vsyncadd (%p1413_p0), %s1280_s9, 4294965248  ;;  %s2453_s26 = sld [smem:[#allocation11_spill]]  ;;  %p22_p3 = scmp.ge.s32.totalorder %s1732_s19, 4  }
 0x301   : > { %s2454_s29 = sld [smem:[#allocation12_spill]]  ;;  %s2455_s27 = smov %s1608_s28 }
 0x302   : > { %s2457_s30 = smov %s1732_s19  ;;  %24 = sbr.rel (!%p22_p3) target bundleno = 8 (0x8), region = 108 }
 0x306   : > { %s2456_s28 = smov %s2453_s26 }
 0x307   :  { %1286 = vsyncpa [#allocation3], 1 }
 0x308   :  { %1288 = vsyncpa [#allocation3 + $0x1], 1 }
 0x309   :  { %1289 = vsyncpa [#allocation6], 1 }
 0x30a   :  { %1290 = vsyncpa [#allocation4], 1 }
 0x30b   :  { %1292 = vsyncpa [#allocation4 + $0x1], 1 }

</bundles_post_ra>
